<compile_context>
chip_gen: v7x
topology: tpu7x:2x2x1
jax: 0.10.0
libtpu: 0.0.40
codegen_flags: <defaults>
</compile_context>

<pallas_src>
import jax
import jax.numpy as jnp
from jax.experimental import pallas as pl
from jax.experimental.pallas import tpu as pltpu

# Layer dimensions implied by the module's __init__.
DIMS = [32, 64, 128, 256, 512, 28 * 28]   # 784


def decoder_kernel(x_ref,
                   w1_ref, b1_ref,
                   w2_ref, b2_ref,
                   w3_ref, b3_ref,
                   w4_ref, b4_ref,
                   w5_ref, b5_ref,
                   o_ref):
    """One batch tile through the whole MLP. Weight/bias blocks have constant
    block indices, so Pallas keeps them resident in VMEM across grid steps."""

    def linear(h_bf16, w_ref, b_ref):
        # bf16 MXU matmul with f32 accumulation; bias add in f32.
        return jnp.dot(h_bf16, w_ref[...],
                       preferred_element_type=jnp.float32) + b_ref[...]

    def relu_bf16(acc_f32):
        # Narrow to bf16 immediately after the ReLU: the cast is needed before
        # the next MXU matmul anyway, and halves intermediate traffic.
        return jnp.maximum(acc_f32, 0.0).astype(jnp.bfloat16)

    h = x_ref[...].astype(jnp.bfloat16)               # (TILE_B, 32)
    h = relu_bf16(linear(h, w1_ref, b1_ref))
    h = relu_bf16(linear(h, w2_ref, b2_ref))
    h = relu_bf16(linear(h, w3_ref, b3_ref))
    h = relu_bf16(linear(h, w4_ref, b4_ref))
    h = linear(h, w5_ref, b5_ref)                     # (TILE_B, 784) f32
    # sigmoid(x) = 0.5 * tanh(0.5 * x) + 0.5 : single EUP transcendental per
    # element (vs exp + reciprocal = 2). Store narrowed to bf16.
    o_ref[...] = (0.5 * jnp.tanh(0.5 * h) + 0.5).astype(o_ref.dtype)


def decoder_forward(x, params, *, tile_b=512):
    """x: (B, 32) float32.
    params: list of (W_bf16 (in, out), b_f32 (1, out)) from prepare_params
    (weights pre-transposed to (in, out)). Returns (B, 784) bfloat16."""
    B = x.shape[0]
    # Tile heuristic:
    #  * multiple of 8 (sublane)
    #  * for small/medium B, split the batch so the grid has >= 2 steps — this
    #    keeps both of v7x's TensorCores busy under "parallel" semantics.
    two_way = max(8, ((pl.cdiv(B, 2) + 7) // 8) * 8)
    tile_b = max(8, min(tile_b, two_way))
    b_pad = pl.cdiv(B, tile_b) * tile_b
    if b_pad != B:
        x = jnp.pad(x, ((0, b_pad - B), (0, 0)))
    grid = (b_pad // tile_b,)

    flat_args = [x]
    in_specs = [pl.BlockSpec((tile_b, DIMS[0]), lambda i: (i, 0))]
    for w, b in params:
        flat_args += [w, b]
        # Constant block index -> weights/biases stay VMEM-resident.
        in_specs += [pl.BlockSpec(w.shape, lambda i: (0, 0)),
                     pl.BlockSpec(b.shape, lambda i: (0, 0))]

    out_dim = DIMS[-1]
    out_dtype = jnp.bfloat16

    weight_bytes = sum(int(w.size) * w.dtype.itemsize +
                       int(b.size) * b.dtype.itemsize for w, b in params)
    flops = 2 * b_pad * sum(w.shape[0] * w.shape[1] for w, _ in params)
    bytes_accessed = (weight_bytes
                      + b_pad * DIMS[0] * 4                       # f32 input
                      + b_pad * out_dim * jnp.dtype(out_dtype).itemsize)
    cost = pl.CostEstimate(flops=int(flops),
                           transcendentals=int(b_pad * out_dim),  # one tanh/elem
                           bytes_accessed=int(bytes_accessed))

    out = pl.pallas_call(
        decoder_kernel,
        out_shape=jax.ShapeDtypeStruct((b_pad, out_dim), out_dtype),
        grid=grid,
        in_specs=in_specs,
        # Last block dim == full array dim (784), so no 128-divisibility issue;
        # only the 16-lane tail of the last vreg group is masked on store.
        out_specs=pl.BlockSpec((tile_b, out_dim), lambda i: (i, 0)),
        compiler_params=pltpu.CompilerParams(
            dimension_semantics=("parallel",)),
        cost_estimate=cost,
    )(*flat_args)

    # Only drop batch padding (cheap); no column de-pad / second full HBM pass.
    return out[:B] if b_pad != B else out


def init_params(key):
    """Deterministic PyTorch-nn.Linear-style init (uniform +/- 1/sqrt(fan_in)).
    Weights stored as (in, out) — transpose of torch's (out, in) — so the
    kernel computes x @ W + b."""
    params = []
    for i in range(len(DIMS) - 1):
        fan_in, fan_out = DIMS[i], DIMS[i + 1]
        key, kw, kb = jax.random.split(key, 3)
        bound = 1.0 / jnp.sqrt(fan_in)
        w = jax.random.uniform(kw, (fan_in, fan_out), jnp.float32, -bound, bound)
        b = jax.random.uniform(kb, (1, fan_out), jnp.float32, -bound, bound)
        params.append((w, b))
    return params


def prepare_params(params_f32):
    """Cast weights to bf16 (native MXU input). Biases stay f32 (bias add /
    ReLU / sigmoid run in f32)."""
    # TODO(synk): optional v7x-only fp8 cast of W5 (dominant-FLOP layer) was
    # skipped — speculative accuracy trade, keep bf16 for portability.
    return [(w.astype(jnp.bfloat16), b.astype(jnp.float32))
            for w, b in params_f32]


def reference_forward(x, prepped_params):
    """Pure-JAX reference mirroring the kernel's bf16-matmul / f32-accumulate
    numerics, for correctness checking. Returns f32."""
    h = x.astype(jnp.bfloat16)
    n = len(prepped_params)
    for i, (w, b) in enumerate(prepped_params):
        h = jnp.dot(h, w, preferred_element_type=jnp.float32) + b
        if i < n - 1:
            h = jnp.maximum(h, 0.0).astype(jnp.bfloat16)
    return jax.nn.sigmoid(h)


if __name__ == "__main__":
    key = jax.random.PRNGKey(0)
    key, kx = jax.random.split(key)

    B = 20  # small; non-multiple of the tile -> exercises batch padding + grid=(2,)
    x = jax.random.uniform(kx, (B, DIMS[0]), jnp.float32)  # latent code (B, 32)

    params = prepare_params(init_params(key))

    out = decoder_forward(x, params)
    out = jax.block_until_ready(out)

    ref = reference_forward(x, params)
    assert out.shape == (B, 28 * 28), out.shape
    max_err = float(jnp.max(jnp.abs(out.astype(jnp.float32) - ref)))
    assert max_err < 1e-2, max_err

    print("KERNEL_OK")
</pallas_src>

<mosaic_0001>
module attributes {stable_mosaic.version = 11 : i64} {
  func.func @decoder_kernel(%arg0: i32, %arg1: memref<16x32xf32, #tpu.memory_space<vmem>>, %arg2: memref<32x64xbf16, #tpu.memory_space<vmem>>, %arg3: memref<1x64xf32, #tpu.memory_space<vmem>>, %arg4: memref<64x128xbf16, #tpu.memory_space<vmem>>, %arg5: memref<1x128xf32, #tpu.memory_space<vmem>>, %arg6: memref<128x256xbf16, #tpu.memory_space<vmem>>, %arg7: memref<1x256xf32, #tpu.memory_space<vmem>>, %arg8: memref<256x512xbf16, #tpu.memory_space<vmem>>, %arg9: memref<1x512xf32, #tpu.memory_space<vmem>>, %arg10: memref<512x784xbf16, #tpu.memory_space<vmem>>, %arg11: memref<1x784xf32, #tpu.memory_space<vmem>>, %arg12: memref<16x784xbf16, #tpu.memory_space<vmem>>) attributes {dimension_semantics = [#tpu.dimension_semantics<parallel>], iteration_bounds = array<i64: 2>, scalar_prefetch = 0 : i64, scratch_operands = 0 : i64, tpu.core_type = #tpu.core_type<tc>, window_params = [{transform_indices = @transform_0, window_bounds = array<i64: 16, 32>}, {pipeline_mode = #tpu.pipeline_mode<synchronous>, transform_indices = @transform_1, window_bounds = array<i64: 32, 64>}, {pipeline_mode = #tpu.pipeline_mode<synchronous>, transform_indices = @transform_2, window_bounds = array<i64: 1, 64>}, {pipeline_mode = #tpu.pipeline_mode<synchronous>, transform_indices = @transform_3, window_bounds = array<i64: 64, 128>}, {pipeline_mode = #tpu.pipeline_mode<synchronous>, transform_indices = @transform_4, window_bounds = array<i64: 1, 128>}, {pipeline_mode = #tpu.pipeline_mode<synchronous>, transform_indices = @transform_5, window_bounds = array<i64: 128, 256>}, {pipeline_mode = #tpu.pipeline_mode<synchronous>, transform_indices = @transform_6, window_bounds = array<i64: 1, 256>}, {pipeline_mode = #tpu.pipeline_mode<synchronous>, transform_indices = @transform_7, window_bounds = array<i64: 256, 512>}, {pipeline_mode = #tpu.pipeline_mode<synchronous>, transform_indices = @transform_8, window_bounds = array<i64: 1, 512>}, {pipeline_mode = #tpu.pipeline_mode<synchronous>, transform_indices = @transform_9, window_bounds = array<i64: 512, 784>}, {pipeline_mode = #tpu.pipeline_mode<synchronous>, transform_indices = @transform_10, window_bounds = array<i64: 1, 784>}, {transform_indices = @transform_11, window_bounds = array<i64: 16, 784>}]} {
    %c0 = arith.constant 0 : index
    %c0_0 = arith.constant 0 : index
    %0 = vector.load %arg1[%c0, %c0_0] : memref<16x32xf32, #tpu.memory_space<vmem>>, vector<16x32xf32>
    %1 = arith.truncf %0 : vector<16x32xf32> to vector<16x32xbf16>
    %c0_1 = arith.constant 0 : index
    %c0_2 = arith.constant 0 : index
    %2 = vector.load %arg2[%c0_1, %c0_2] : memref<32x64xbf16, #tpu.memory_space<vmem>>, vector<32x64xbf16>
    %cst = arith.constant dense<0.000000e+00> : vector<16x64xf32>
    %3 = tpu.matmul %1, %2, %cst {dimension_numbers = #tpu.dot_dimension_numbers<[1], [0], [0], [1], [0, 0, 1, 1], [], []>} : vector<16x32xbf16>, vector<32x64xbf16>, vector<16x64xf32> -> vector<16x64xf32>
    %c0_3 = arith.constant 0 : index
    %c0_4 = arith.constant 0 : index
    %4 = vector.load %arg3[%c0_3, %c0_4] : memref<1x64xf32, #tpu.memory_space<vmem>>, vector<1x64xf32>
    %5 = vector.broadcast %4 : vector<1x64xf32> to vector<16x64xf32>
    %6 = arith.addf %3, %5 : vector<16x64xf32>
    %cst_5 = arith.constant 0.000000e+00 : f32
    %7 = vector.broadcast %cst_5 : f32 to vector<16x64xf32>
    %8 = arith.maximumf %6, %7 : vector<16x64xf32>
    %9 = arith.truncf %8 : vector<16x64xf32> to vector<16x64xbf16>
    %c0_6 = arith.constant 0 : index
    %c0_7 = arith.constant 0 : index
    %10 = vector.load %arg4[%c0_6, %c0_7] : memref<64x128xbf16, #tpu.memory_space<vmem>>, vector<64x128xbf16>
    %cst_8 = arith.constant dense<0.000000e+00> : vector<16x128xf32>
    %11 = tpu.matmul %9, %10, %cst_8 {dimension_numbers = #tpu.dot_dimension_numbers<[1], [0], [0], [1], [0, 0, 1, 1], [], []>} : vector<16x64xbf16>, vector<64x128xbf16>, vector<16x128xf32> -> vector<16x128xf32>
    %c0_9 = arith.constant 0 : index
    %c0_10 = arith.constant 0 : index
    %12 = vector.load %arg5[%c0_9, %c0_10] : memref<1x128xf32, #tpu.memory_space<vmem>>, vector<1x128xf32>
    %13 = vector.broadcast %12 : vector<1x128xf32> to vector<16x128xf32>
    %14 = arith.addf %11, %13 : vector<16x128xf32>
    %cst_11 = arith.constant 0.000000e+00 : f32
    %15 = vector.broadcast %cst_11 : f32 to vector<16x128xf32>
    %16 = arith.maximumf %14, %15 : vector<16x128xf32>
    %17 = arith.truncf %16 : vector<16x128xf32> to vector<16x128xbf16>
    %c0_12 = arith.constant 0 : index
    %c0_13 = arith.constant 0 : index
    %18 = vector.load %arg6[%c0_12, %c0_13] : memref<128x256xbf16, #tpu.memory_space<vmem>>, vector<128x256xbf16>
    %cst_14 = arith.constant dense<0.000000e+00> : vector<16x256xf32>
    %19 = tpu.matmul %17, %18, %cst_14 {dimension_numbers = #tpu.dot_dimension_numbers<[1], [0], [0], [1], [0, 0, 1, 1], [], []>} : vector<16x128xbf16>, vector<128x256xbf16>, vector<16x256xf32> -> vector<16x256xf32>
    %c0_15 = arith.constant 0 : index
    %c0_16 = arith.constant 0 : index
    %20 = vector.load %arg7[%c0_15, %c0_16] : memref<1x256xf32, #tpu.memory_space<vmem>>, vector<1x256xf32>
    %21 = vector.broadcast %20 : vector<1x256xf32> to vector<16x256xf32>
    %22 = arith.addf %19, %21 : vector<16x256xf32>
    %cst_17 = arith.constant 0.000000e+00 : f32
    %23 = vector.broadcast %cst_17 : f32 to vector<16x256xf32>
    %24 = arith.maximumf %22, %23 : vector<16x256xf32>
    %25 = arith.truncf %24 : vector<16x256xf32> to vector<16x256xbf16>
    %c0_18 = arith.constant 0 : index
    %c0_19 = arith.constant 0 : index
    %26 = vector.load %arg8[%c0_18, %c0_19] : memref<256x512xbf16, #tpu.memory_space<vmem>>, vector<256x512xbf16>
    %cst_20 = arith.constant dense<0.000000e+00> : vector<16x512xf32>
    %27 = tpu.matmul %25, %26, %cst_20 {dimension_numbers = #tpu.dot_dimension_numbers<[1], [0], [0], [1], [0, 0, 1, 1], [], []>} : vector<16x256xbf16>, vector<256x512xbf16>, vector<16x512xf32> -> vector<16x512xf32>
    %c0_21 = arith.constant 0 : index
    %c0_22 = arith.constant 0 : index
    %28 = vector.load %arg9[%c0_21, %c0_22] : memref<1x512xf32, #tpu.memory_space<vmem>>, vector<1x512xf32>
    %29 = vector.broadcast %28 : vector<1x512xf32> to vector<16x512xf32>
    %30 = arith.addf %27, %29 : vector<16x512xf32>
    %cst_23 = arith.constant 0.000000e+00 : f32
    %31 = vector.broadcast %cst_23 : f32 to vector<16x512xf32>
    %32 = arith.maximumf %30, %31 : vector<16x512xf32>
    %33 = arith.truncf %32 : vector<16x512xf32> to vector<16x512xbf16>
    %c0_24 = arith.constant 0 : index
    %c0_25 = arith.constant 0 : index
    %34 = vector.load %arg10[%c0_24, %c0_25] : memref<512x784xbf16, #tpu.memory_space<vmem>>, vector<512x784xbf16>
    %cst_26 = arith.constant dense<0.000000e+00> : vector<16x784xf32>
    %35 = tpu.matmul %33, %34, %cst_26 {dimension_numbers = #tpu.dot_dimension_numbers<[1], [0], [0], [1], [0, 0, 1, 1], [], []>} : vector<16x512xbf16>, vector<512x784xbf16>, vector<16x784xf32> -> vector<16x784xf32>
    %c0_27 = arith.constant 0 : index
    %c0_28 = arith.constant 0 : index
    %36 = vector.load %arg11[%c0_27, %c0_28] : memref<1x784xf32, #tpu.memory_space<vmem>>, vector<1x784xf32>
    %37 = vector.broadcast %36 : vector<1x784xf32> to vector<16x784xf32>
    %38 = arith.addf %35, %37 : vector<16x784xf32>
    %cst_29 = arith.constant 5.000000e-01 : f32
    %39 = vector.broadcast %cst_29 : f32 to vector<16x784xf32>
    %40 = arith.mulf %39, %38 : vector<16x784xf32>
    %41 = math.tanh %40 : vector<16x784xf32>
    %cst_30 = arith.constant 5.000000e-01 : f32
    %42 = vector.broadcast %cst_30 : f32 to vector<16x784xf32>
    %43 = arith.mulf %42, %41 : vector<16x784xf32>
    %cst_31 = arith.constant 5.000000e-01 : f32
    %44 = vector.broadcast %cst_31 : f32 to vector<16x784xf32>
    %45 = arith.addf %43, %44 : vector<16x784xf32>
    %46 = arith.truncf %45 : vector<16x784xf32> to vector<16x784xbf16>
    %c0_32 = arith.constant 0 : index
    %c0_33 = arith.constant 0 : index
    %47 = vector.load %arg12[%c0_32, %c0_33] : memref<16x784xbf16, #tpu.memory_space<vmem>>, vector<16x784xbf16>
    tpu.vector_store %arg12[%c0_32, %c0_33], %46 {strides = array<i32>} : memref<16x784xbf16, #tpu.memory_space<vmem>>, vector<16x784xbf16>,
    return
  }
  func.func @transform_0(%arg0: i32) -> (i32, i32) {
    %c0_i32 = arith.constant 0 : i32
    %c0_i32_0 = arith.constant 0 : i32
    return %arg0, %c0_i32 : i32, i32
  }
  func.func @transform_1(%arg0: i32) -> (i32, i32) {
    %c0_i32 = arith.constant 0 : i32
    %c0_i32_0 = arith.constant 0 : i32
    %c0_i32_1 = arith.constant 0 : i32
    return %c0_i32, %c0_i32_0 : i32, i32
  }
  func.func @transform_2(%arg0: i32) -> (i32, i32) {
    %c0_i32 = arith.constant 0 : i32
    %c0_i32_0 = arith.constant 0 : i32
    %c0_i32_1 = arith.constant 0 : i32
    return %c0_i32, %c0_i32_0 : i32, i32
  }
  func.func @transform_3(%arg0: i32) -> (i32, i32) {
    %c0_i32 = arith.constant 0 : i32
    %c0_i32_0 = arith.constant 0 : i32
    %c0_i32_1 = arith.constant 0 : i32
    return %c0_i32, %c0_i32_0 : i32, i32
  }
  func.func @transform_4(%arg0: i32) -> (i32, i32) {
    %c0_i32 = arith.constant 0 : i32
    %c0_i32_0 = arith.constant 0 : i32
    %c0_i32_1 = arith.constant 0 : i32
    return %c0_i32, %c0_i32_0 : i32, i32
  }
  func.func @transform_5(%arg0: i32) -> (i32, i32) {
    %c0_i32 = arith.constant 0 : i32
    %c0_i32_0 = arith.constant 0 : i32
    %c0_i32_1 = arith.constant 0 : i32
    return %c0_i32, %c0_i32_0 : i32, i32
  }
  func.func @transform_6(%arg0: i32) -> (i32, i32) {
    %c0_i32 = arith.constant 0 : i32
    %c0_i32_0 = arith.constant 0 : i32
    %c0_i32_1 = arith.constant 0 : i32
    return %c0_i32, %c0_i32_0 : i32, i32
  }
  func.func @transform_7(%arg0: i32) -> (i32, i32) {
    %c0_i32 = arith.constant 0 : i32
    %c0_i32_0 = arith.constant 0 : i32
    %c0_i32_1 = arith.constant 0 : i32
    return %c0_i32, %c0_i32_0 : i32, i32
  }
  func.func @transform_8(%arg0: i32) -> (i32, i32) {
    %c0_i32 = arith.constant 0 : i32
    %c0_i32_0 = arith.constant 0 : i32
    %c0_i32_1 = arith.constant 0 : i32
    return %c0_i32, %c0_i32_0 : i32, i32
  }
  func.func @transform_9(%arg0: i32) -> (i32, i32) {
    %c0_i32 = arith.constant 0 : i32
    %c0_i32_0 = arith.constant 0 : i32
    %c0_i32_1 = arith.constant 0 : i32
    return %c0_i32, %c0_i32_0 : i32, i32
  }
  func.func @transform_10(%arg0: i32) -> (i32, i32) {
    %c0_i32 = arith.constant 0 : i32
    %c0_i32_0 = arith.constant 0 : i32
    %c0_i32_1 = arith.constant 0 : i32
    return %c0_i32, %c0_i32_0 : i32, i32
  }
  func.func @transform_11(%arg0: i32) -> (i32, i32) {
    %c0_i32 = arith.constant 0 : i32
    %c0_i32_0 = arith.constant 0 : i32
    return %arg0, %c0_i32 : i32, i32
  }
}

</mosaic_0001>

<bundles_post_ra>
// kernel: tpu_custom_call.1
= control target key start
LH: loop header
LB: loop body
LE: loop exit
PB: predicated region body
PF: predicated region fallthrough
CT: control target
= control target key end

     0   :  { %s5393_s0 = inlined_call_operand.vmem [shape: f32[32,32], index: 0, kind: input, shape index: {}]   ;;  %s5394_s1 = inlined_call_operand.vmem [shape: bf16[32,64], index: 1, kind: input, shape index: {}]   ;;  %s5395_s2 = inlined_call_operand.vmem [shape: f32[1,64], index: 2, kind: input, shape index: {}]   ;;  %s5396_s3 = inlined_call_operand.vmem [shape: bf16[64,128], index: 3, kind: input, shape index: {}]   ;;  %s5397_s4 = inlined_call_operand.vmem [shape: f32[1,128], index: 4, kind: input, shape index: {}]   ;;  %s5398_s5 = inlined_call_operand.vmem [shape: bf16[128,256], index: 5, kind: input, shape index: {}]   ;;  %s5399_s6 = inlined_call_operand.vmem [shape: f32[1,256], index: 6, kind: input, shape index: {}]   ;;  %s5400_s7 = inlined_call_operand.vmem [shape: bf16[256,512], index: 7, kind: input, shape index: {}]   ;;  %s5401_s8 = inlined_call_operand.vmem [shape: f32[1,512], index: 8, kind: input, shape index: {}]   ;;  %s5402_s9 = inlined_call_operand.vmem [shape: bf16[512,784], index: 9, kind: input, shape index: {}]   ;;  %s5403_s10 = inlined_call_operand.vmem [shape: f32[1,784], index: 10, kind: input, shape index: {}]   ;;  %s5404_s11 = inlined_call_operand.hbm [shape: bf16[32,784], index: 11, kind: output, shape index: {}]  }
   0x1   :  { %5405 = sst [smem:[#allocation5_spill]] %s5393_s0 }
   0x2   :  { %16 = vsyncpa [#allocation3], 0 }
   0x3   :  { %18 = vsyncpa [#allocation3 + $0x1], 0  ;;  %s4269_s17 = smov 0   ;;  %s4271_s18 = smov 0  }
   0x4   :  { %s4273_s19 = smov 0   ;;  %s4275_s20 = smov 0  }
   0x5 LB: > { %s4290_s21 = sadd.s32 4294967295, %s4201_s20   ;;  %s3182_s22 = sadd.s32 4294967294, %s4201_s20   ;;  %s4201_s20 = sphi %s4275_s20, %s5412_s20   ;;  %s4197_s19 = sphi %s4273_s19, %s5411_s19   ;;  %s4193_s18 = sphi %s4271_s18, %s5410_s18   ;;  %s4189_s17 = sphi %s4269_s17, %s5409_s17  }
   0x6   : > { %s4294_s23 = sadd.s32 1, %s4201_s20   ;;  %s267_s24 = sadd.s32 1, %s4197_s19 }
   0x7   : > { %s264_s25 = ssub.s32 %s4201_s20, %s4294_s23  ;;  %p277_p0 = scmp.ne.s32.totalorder %s4197_s19, %s4193_s18 }
   0x8   : > { %p265_p1 = scmp.eq.s32.totalorder %s264_s25, 0  ;;  %p278_p2 = scmp.eq.s32.totalorder %s4290_s21, 1 }
   0x9   : > { %p283_p3 = scmp.ne.s32.totalorder %s4193_s18, %s4189_s17  ;;  %p284_p4 = scmp.eq.s32.totalorder %s3182_s22, 1 }
   0xa   : > { %s4305_s26 = scalar_select %p265_p1, %s4197_s19, %s267_s24  }
   0xb   : > { %p4307_p5 = por %p278_p2, %p277_p0  ;;  %p4311_p6 = por %p284_p4, %p283_p3 }
   0xc   : > { %p3185_p7 = scmp.ge.s32.totalorder %s4201_s20, 1  ;;  %p341_p8 = scmp.lt.s32.totalorder %s4201_s20, 3 }
   0xe   : > { %p342_p9 = pnand %p3185_p7, %p341_p8 }
   0xf   : > { %v3665_v0 = vld [vmem:[%s5394_s1] sm:$0xff] (!%p342_p9)   ;;  %v4203_v1 = vmov (!%p342_p9), 0.0   ;;  %v3666_v2 = vld [vmem:[%s5394_s1 + $0x8] sm:$0xff] (!%p342_p9)   ;;  %vm4204_vm0 = vmmov (!%p342_p9), 0   ;;  %s3186_s14 = sshll.u32 (!%p342_p9), %s4290_s21, 1  ;;  %s5408_s0 = sld [smem:[#allocation5_spill]] (!%p342_p9) }
  0x10   : > { %345 = sbr.rel (%p342_p9) target bundleno = 1356 (0x54c), region = 64  ;;  %3575 = vmatprep.subr.bf16.mxu0 (!%p342_p9), %v4203_v1  ;;  %3579 = vmatprep.mubr.msk.bf16.mxu0 (!%p342_p9), %vm4204_vm0, %v4203_v1  ;;  %p382_p10 = scmp.lt.s32.totalorder (!%p342_p9), %s3186_s14, 3  ;;  %v3667_v3 = vld [vmem:[%s5396_s3] sm:$0xff] (!%p342_p9)   ;;  %vm415_vm1 = vcmask (!%p342_p9), 261120   ;;  %v3668_v7 = vld [vmem:[%s5396_s3 + $0x8] sm:$0xff] (!%p342_p9)   ;;  %v3669_v8 = vld [vmem:[%s5396_s3 + $0x10] sm:$0xff] (!%p342_p9)  }
  0x11   : > { %3576 = vmatpush3.bf16.msra.mxu0 (!%p342_p9), %v3665_v0  ;;  %v3670_v9 = vld [vmem:[%s5396_s3 + $0x18] sm:$0xff] (!%p342_p9)   ;;  %v3673_v10 = vld [vmem:[%s5398_s5 + $0x4] ss:$8 sps:$4 sm:$0xff] (!%p342_p9)   ;;  %v3188_v11 = vld [vmem:[%s5395_s2] ss:$0 sm:$0xff] (!%p342_p9)  ;;  %vm502_vm2 = vcmask (!%p342_p9), 523264  }
  0x12   : > { %3577 = vmatprep.subr.bf16.mxu0 (!%p342_p9), %v4203_v1  ;;  %v3671_v20 = vld [vmem:[%s5398_s5] ss:$8 sps:$4 sm:$0xff] (!%p342_p9)   ;;  %v3676_v22 = vld [vmem:[%s5398_s5 + $0x14] ss:$8 sps:$4 sm:$0xff] (!%p342_p9)   ;;  %v3674_v23 = vld [vmem:[%s5398_s5 + $0x10] ss:$8 sps:$4 sm:$0xff] (!%p342_p9)  }
  0x13   : > { %v3679_v24 = vld [vmem:[%s5398_s5 + $0x24] ss:$8 sps:$4 sm:$0xff] (!%p342_p9)   ;;  %v3677_v25 = vld [vmem:[%s5398_s5 + $0x20] ss:$8 sps:$4 sm:$0xff] (!%p342_p9)   ;;  %v3682_v26 = vld [vmem:[%s5398_s5 + $0x34] ss:$8 sps:$4 sm:$0xff] (!%p342_p9)  }
  0x14   : > { %v3680_v27 = vld [vmem:[%s5398_s5 + $0x30] ss:$8 sps:$4 sm:$0xff] (!%p342_p9)   ;;  %v3685_v28 = vld [vmem:[%s5398_s5 + $0x44] ss:$8 sps:$4 sm:$0xff] (!%p342_p9)   ;;  %v3683_v29 = vld [vmem:[%s5398_s5 + $0x40] ss:$8 sps:$4 sm:$0xff] (!%p342_p9)  }
  0x15   : > { %3578 = vmatpush3.bf16.msra.mxu0 (!%p342_p9), %v3666_v2  ;;  %v3688_v30 = vld [vmem:[%s5398_s5 + $0x54] ss:$8 sps:$4 sm:$0xff] (!%p342_p9)   ;;  %v3686_v31 = vld [vmem:[%s5398_s5 + $0x50] ss:$8 sps:$4 sm:$0xff] (!%p342_p9)   ;;  %v3691_v32 = vld [vmem:[%s5398_s5 + $0x64] ss:$8 sps:$4 sm:$0xff] (!%p342_p9)  }
  0x16   : > { %3583 = vmatprep.subr.bf16.mxu0 (!%p342_p9), %v4203_v1  ;;  %v3689_v33 = vld [vmem:[%s5398_s5 + $0x60] ss:$8 sps:$4 sm:$0xff] (!%p342_p9)   ;;  %v3694_v34 = vld [vmem:[%s5398_s5 + $0x74] ss:$8 sps:$4 sm:$0xff] (!%p342_p9)   ;;  %v3692_v35 = vld [vmem:[%s5398_s5 + $0x70] ss:$8 sps:$4 sm:$0xff] (!%p342_p9)  }
  0x17   : > { %s5414_s14 = smov (!%p382_p10, %s3186_s14), 3  ;;  %v4205_v36 = vmov 0   ;;  %v3695_v37 = vld [vmem:[%s5400_s7 + $0x4] ss:$16 sps:$4 sm:$0xff]   ;;  %v3699_v38 = vld [vmem:[%s5400_s7 + $0xc] ss:$16 sps:$4 sm:$0xff]  }
  0x18   : > { %s3187_s15 = sshll.u32 %s5414_s14, 3  ;;  %v3700_v39 = vld [vmem:[%s5400_s7] ss:$16 sps:$4 sm:$0xff]   ;;  %v3701_v40 = vld [vmem:[%s5400_s7 + $0x24] ss:$16 sps:$4 sm:$0xff]   ;;  %1113 = vmatprep.subr.bf16.mxu1 %v3695_v37  ;;  %vm3099_vm3 = vcmask 125952  }
  0x19   : > { %s385_s29 = scalar_lea.vmem %s5408_s0, %s3187_s15  ;;  %1114 = vmatpush1.bf16.msra.mxu1 %v3700_v39  ;;  %v3706_v41 = vld [vmem:[%s5400_s7 + $0x20] ss:$16 sps:$4 sm:$0xff]   ;;  %v3707_v42 = vld [vmem:[%s5400_s7 + $0x44] ss:$16 sps:$4 sm:$0xff]   ;;  %v3775_v37 = vld [vmem:[%s5400_s7 + $0x1a8] ss:$16 sps:$4 sm:$0xff]  }
  0x1a   : > { %v389_v4 = vld [vmem:[%s385_s29] sm:$0xff]  ;;  %v390_v5 = vld [vmem:[%s385_s29 + $0x8] sm:$0xff]  ;;  %1115 = vmatprep.subr.bf16.mxu1 %v3701_v40  ;;  %s378_s15 = sand.u32 1, %s4193_s18   ;;  %s3620_s24 = smul.u32 896, %s4290_s21 }
  0x1b   : > { %v391_v6 = vpack.c.bf16 %v390_v5, %v389_v4  ;;  %v3712_v43 = vld [vmem:[%s5400_s7 + $0x40] ss:$16 sps:$4 sm:$0xff]   ;;  %v3713_v44 = vld [vmem:[%s5400_s7 + $0x64] ss:$16 sps:$4 sm:$0xff]   ;;  %v3783_v40 = vld [vmem:[%s5400_s7 + $0x1cc] ss:$16 sps:$4 sm:$0xff]  }
  0x1c   : > { %v3718_v45 = vld [vmem:[%s5400_s7 + $0x60] ss:$16 sps:$4 sm:$0xff]   ;;  %v3719_v46 = vld [vmem:[%s5400_s7 + $0x84] ss:$16 sps:$4 sm:$0xff]   ;;  %s3619_s16 = smul.u32 56, %s378_s15  ;;  %s5347_s12 = scalar_lea.hbm %s5404_s11, %s3620_s24 }
  0x1d   : > { %3580 = vmatmul.mubr.msk.bf16.vlgmr.msra.gmra.mrb[0].mxu0 %vm415_vm1, %v391_v6  ;;  %1116 = vmatpush1.bf16.msra.mxu1 %v3706_v41  ;;  %v3724_v47 = vld [vmem:[%s5400_s7 + $0x80] ss:$16 sps:$4 sm:$0xff]   ;;  %v3725_v48 = vld [vmem:[%s5400_s7 + $0xa4] ss:$16 sps:$4 sm:$0xff]   ;;  %v3781_v41 = vld [vmem:[%s5400_s7 + $0x1c8] ss:$16 sps:$4 sm:$0xff]  }
  0x1e   : > { %3584 = vmatpush3.bf16.msra.mxu0 %v3667_v3  ;;  %3591 = vmatprep.mubr.msk.bf16.mxu0 %vm4204_vm0, %v4203_v1  ;;  %v3730_v49 = vld [vmem:[%s5400_s7 + $0xa0] ss:$16 sps:$4 sm:$0xff]   ;;  %v3731_v50 = vld [vmem:[%s5400_s7 + $0xc4] ss:$16 sps:$4 sm:$0xff]   ;;  %s5325_s22 = scalar_lea.vmem [#allocation2], %s3619_s16  ;;  %s5352_s13 = scalar_lea.sflag [#allocation3], %s378_s15 }
  0x1f   : > { %3585 = vmatprep.subr.bf16.mxu0 %v4203_v1  ;;  %1117 = vmatprep.subr.bf16.mxu1 %v3707_v42  ;;  %v3736_v51 = vld [vmem:[%s5400_s7 + $0xc0] ss:$16 sps:$4 sm:$0xff]   ;;  %v3737_v52 = vld [vmem:[%s5400_s7 + $0xe4] ss:$16 sps:$4 sm:$0xff]   ;;  %s3120_s25 = sshll.u32 %s5325_s22, 4  ;;  %s4206_s14 = smov [#allocation2]   ;;  %s5341_s25 = int_to_ptr.vmem [resolvable:$true] %s3120_s25 }
  0x20   : > { %v3742_v53 = vld [vmem:[%s5400_s7 + $0xe0] ss:$16 sps:$4 sm:$0xff]   ;;  %v3743_v54 = vld [vmem:[%s5400_s7 + $0x104] ss:$16 sps:$4 sm:$0xff]   ;;  %s4139_s21 = scalar_lea.vmem %s5341_s25, 896  ;;  %s4143_s16 = sshll.u32 %s4206_s14, 4  ;;  %s4144_s16 = int_to_ptr.vmem [resolvable:$false] %s4143_s16 }
  0x21   : > { %1118 = vmatpush1.bf16.msra.mxu1 %v3712_v43  ;;  %v3748_v55 = vld [vmem:[%s5400_s7 + $0x100] ss:$16 sps:$4 sm:$0xff]   ;;  %v3749_v56 = vld [vmem:[%s5400_s7 + $0x124] ss:$16 sps:$4 sm:$0xff]   ;;  %p4140_p11 = scmp.ne.s32.totalorder %s5341_s25, %s4139_s21  ;;  %s4145_s0 = scalar_lea.vmem %s4144_s16, 1792 }
  0x22   : > { %3586 = vmatpush3.bf16.msra.mxu0 %v3668_v7  ;;  %1119 = vmatprep.subr.bf16.mxu1 %v3713_v44  ;;  %v3754_v57 = vld [vmem:[%s5400_s7 + $0x120] ss:$16 sps:$4 sm:$0xff]   ;;  %v3755_v58 = vld [vmem:[%s5400_s7 + $0x144] ss:$16 sps:$4 sm:$0xff]   ;;  %v3789_v44 = vld [vmem:[%s5400_s7 + $0x1ec] ss:$16 sps:$4 sm:$0xff]   ;;  %p4146_p0 = scmp.lt.s32.totalorder %s5341_s25, %s4144_s16  ;;  %p4147_p1 = scmp.lt.s32.totalorder %s4145_s0, %s4139_s21 }
  0x23   : > { %3587 = vmatprep.subr.bf16.mxu0 %v4203_v1  ;;  %v3760_v59 = vld [vmem:[%s5400_s7 + $0x140] ss:$16 sps:$4 sm:$0xff]   ;;  %v3761_v60 = vld [vmem:[%s5400_s7 + $0x164] ss:$16 sps:$4 sm:$0xff]   ;;  %p4141_p12 = pnand %p4140_p11, %p4307_p5 }
  0x24   : > { %v3766_v61 = vld [vmem:[%s5400_s7 + $0x160] ss:$16 sps:$4 sm:$0xff]   ;;  %v3767_v62 = vld [vmem:[%s5400_s7 + $0x184] ss:$16 sps:$4 sm:$0xff]   ;;  %p4148_p2 = por %p4147_p1, %p4146_p0 }
  0x25   : > { %1120 = vmatpush1.bf16.msra.mxu1 %v3718_v45  ;;  %v3772_v63 = vld [vmem:[%s5400_s7 + $0x180] ss:$16 sps:$4 sm:$0xff]   ;;  %v3773_v0 = vld [vmem:[%s5400_s7 + $0x1a4] ss:$16 sps:$4 sm:$0xff]   ;;  %v3787_v45 = vld [vmem:[%s5400_s7 + $0x1e8] ss:$16 sps:$4 sm:$0xff]   ;;  %p4142_p13 = pneg %p4141_p12 }
  0x26   : > { %3588 = vmatpush3.bf16.msra.mxu0 %v3669_v8  ;;  %1121 = vmatprep.subr.bf16.mxu1 %v3719_v46  ;;  %v3779_v39 = vld [vmem:[%s5400_s7 + $0x1c4] ss:$16 sps:$4 sm:$0xff]   ;;  %v3784_v42 = vld [vmem:[%s5400_s7 + $0x1c0] ss:$16 sps:$4 sm:$0xff]  }
  0x27   : > { %3589 = vmatprep.subr.bf16.mxu0 %v4203_v1  ;;  %v3192_v1 = vld [vmem:[%s5397_s4] ss:$0 sm:$0xff]  ;;  %v3785_v43 = vld [vmem:[%s5400_s7 + $0x1e4] ss:$16 sps:$4 sm:$0xff]   ;;  %p4149_p3 = pnand %p4148_p2, %p4142_p13 }
  0x28   : > { %v3790_v46 = vld [vmem:[%s5400_s7 + $0x1e0] ss:$16 sps:$4 sm:$0xff]  }
  0x29   : > { %1122 = vmatpush1.bf16.msra.mxu1 %v3724_v47  ;;  %v3793_v47 = vld [vmem:[%s5402_s9 + $0x4] ss:$28 sps:$4 sm:$0xff]  }
  0x2a   : > { %3590 = vmatpush3.bf16.msra.mxu0 %v3670_v9  ;;  %1123 = vmatprep.subr.bf16.mxu1 %v3725_v48  ;;  %v3796_v48 = vld [vmem:[%s5402_s9 + $0xc] ss:$28 sps:$4 sm:$0xff]  }
  0x2b   : > { %658 = vmatprep.subr.bf16.mxu0 %v3673_v10  ;;  %v3697_v10 = vld [vmem:[%s5400_s7 + $0x8] ss:$16 sps:$4 sm:$0xff]  }
  0x2d   : > { %1124 = vmatpush1.bf16.msra.mxu1 %v3730_v49  ;;  %v568_v49 = vlaneseq }
  0x2e   : > { %1125 = vmatprep.subr.bf16.mxu1 %v3731_v50 }
  0x2f   : > { %v4593_v50 = vshrl.u32 %v568_v49, 7  ;;  %v3862_v49 = vld [vmem:[%s5402_s9 + $0x274] ss:$28 sps:$4 sm:$0xff]  }
  0x31   : > { %1126 = vmatpush1.bf16.msra.mxu1 %v3736_v51  ;;  %v4596_v51 = vsub.s32 0, %v4593_v50 }
  0x32   : > { %1127 = vmatprep.subr.bf16.mxu1 %v3737_v52  ;;  %v566_v52 = vld [vmem:[%s5399_s6] sm:$0x3] }
  0x35   : > { %1128 = vmatpush1.bf16.msra.mxu1 %v3742_v53  ;;  %v4602_v53 = vsub.s32 1, %v4593_v50 }
  0x36   : > { %1129 = vmatprep.subr.bf16.mxu1 %v3743_v54  ;;  %v571_v54 = vrot.slane %v566_v52, %v4596_v51 }
  0x39   : > { %1130 = vmatpush1.bf16.msra.mxu1 %v3748_v55  ;;  %v575_v55 = vrot.slane %v566_v52, %v4602_v53  ;;  %v3857_v52 = vld [vmem:[%s5402_s9 + $0x268] ss:$28 sps:$4 sm:$0xff]  }
  0x3a   : > { %1131 = vmatprep.subr.bf16.mxu1 %v3749_v56 }
  0x3d   : > { %1132 = vmatpush1.bf16.msra.mxu1 %v3754_v57 }
  0x3e   : > { %1133 = vmatprep.subr.bf16.mxu1 %v3755_v58 }
  0x41   : > { %1134 = vmatpush1.bf16.msra.mxu1 %v3760_v59 }
  0x42   : > { %1135 = vmatprep.subr.bf16.mxu1 %v3761_v60 }
  0x45   : > { %1136 = vmatpush1.bf16.msra.mxu1 %v3766_v61 }
  0x46   : > { %1137 = vmatprep.subr.bf16.mxu1 %v3767_v62 }
  0x49   : > { %1138 = vmatpush1.bf16.msra.mxu1 %v3772_v63 }
  0x4a   : > { %1139 = vmatprep.subr.bf16.mxu1 %v3773_v0 }
  0xf0   : > { %v453_v12 = vpop.f32.mrb[0].mxu0 }
  0xf1   : > { %v454_v13 = vadd.f32 %v3188_v11, %v453_v12  ;;  %v3581_v14 = vpop.f32.mrb[1].mxu0  ;;  %v3705_v12 = vld [vmem:[%s5400_s7 + $0x2c] ss:$16 sps:$4 sm:$0xff]  }
  0xf2   : > { %v456_v15 = vpop.f32.mrb[2].mxu0  ;;  %v3711_v14 = vld [vmem:[%s5400_s7 + $0x4c] ss:$16 sps:$4 sm:$0xff]  }
  0xf3   : > { %v457_v16 = vadd.f32 %v3188_v11, %v456_v15  ;;  %v3582_v17 = vpop.f32.mrb[3].mxu0  ;;  %v460_v18 = vmax.f32 %v454_v13, 0.0  ;;  %v3703_v13 = vld [vmem:[%s5400_s7 + $0x28] ss:$16 sps:$4 sm:$0xff]  }
  0xf4   : > { %v3709_v15 = vld [vmem:[%s5400_s7 + $0x48] ss:$16 sps:$4 sm:$0xff]  }
  0xf5   : > { %v461_v19 = vmax.f32 %v457_v16, 0.0  ;;  %v3717_v16 = vld [vmem:[%s5400_s7 + $0x6c] ss:$16 sps:$4 sm:$0xff]   ;;  %v3715_v17 = vld [vmem:[%s5400_s7 + $0x68] ss:$16 sps:$4 sm:$0xff]  }
  0xf7   : > { %v462_v21 = vpack.c.bf16 %v461_v19, %v460_v18  ;;  %v3723_v18 = vld [vmem:[%s5400_s7 + $0x8c] ss:$16 sps:$4 sm:$0xff]   ;;  %v3721_v19 = vld [vmem:[%s5400_s7 + $0x88] ss:$16 sps:$4 sm:$0xff]  }
  0xf9   : > { %3592 = vmatmul.mubr.msk.bf16.vlgmr.msra.gmra.mrb[4].mxu0 %vm502_vm2, %v462_v21  ;;  %v3727_v21 = vld [vmem:[%s5400_s7 + $0xa8] ss:$16 sps:$4 sm:$0xff]  }
  0xfa   : > { %659 = vmatpush1.bf16.msra.mxu0 %v3671_v20  ;;  %690 = vmatprep.mubr.bf16.mxu0 %v4205_v36  ;;  %v3729_v20 = vld [vmem:[%s5400_s7 + $0xac] ss:$16 sps:$4 sm:$0xff]  }
  0xfb   : > { %660 = vmatprep.subr.bf16.mxu0 %v3676_v22  ;;  %v3735_v22 = vld [vmem:[%s5400_s7 + $0xcc] ss:$16 sps:$4 sm:$0xff]  }
  0xfc   : > { %v3777_v36 = vld [vmem:[%s5400_s7 + $0x1ac] ss:$16 sps:$4 sm:$0xff]  }
  0xfe   : > { %661 = vmatpush1.bf16.msra.mxu0 %v3674_v23  ;;  %v3733_v23 = vld [vmem:[%s5400_s7 + $0xc8] ss:$16 sps:$4 sm:$0xff]  }
  0xff   : > { %662 = vmatprep.subr.bf16.mxu0 %v3679_v24  ;;  %v3741_v24 = vld [vmem:[%s5400_s7 + $0xec] ss:$16 sps:$4 sm:$0xff]  }
 0x102   : > { %663 = vmatpush1.bf16.msra.mxu0 %v3677_v25  ;;  %v3739_v25 = vld [vmem:[%s5400_s7 + $0xe8] ss:$16 sps:$4 sm:$0xff]  }
 0x103   : > { %664 = vmatprep.subr.bf16.mxu0 %v3682_v26  ;;  %v3747_v26 = vld [vmem:[%s5400_s7 + $0x10c] ss:$16 sps:$4 sm:$0xff]  }
 0x106   : > { %665 = vmatpush1.bf16.msra.mxu0 %v3680_v27  ;;  %v3745_v27 = vld [vmem:[%s5400_s7 + $0x108] ss:$16 sps:$4 sm:$0xff]  }
 0x107   : > { %666 = vmatprep.subr.bf16.mxu0 %v3685_v28  ;;  %v3753_v28 = vld [vmem:[%s5400_s7 + $0x12c] ss:$16 sps:$4 sm:$0xff]  }
 0x10a   : > { %667 = vmatpush1.bf16.msra.mxu0 %v3683_v29  ;;  %v3751_v29 = vld [vmem:[%s5400_s7 + $0x128] ss:$16 sps:$4 sm:$0xff]  }
 0x10b   : > { %668 = vmatprep.subr.bf16.mxu0 %v3688_v30  ;;  %v3759_v30 = vld [vmem:[%s5400_s7 + $0x14c] ss:$16 sps:$4 sm:$0xff]  }
 0x10e   : > { %669 = vmatpush1.bf16.msra.mxu0 %v3686_v31  ;;  %v3757_v31 = vld [vmem:[%s5400_s7 + $0x148] ss:$16 sps:$4 sm:$0xff]  }
 0x10f   : > { %670 = vmatprep.subr.bf16.mxu0 %v3691_v32  ;;  %v3765_v32 = vld [vmem:[%s5400_s7 + $0x16c] ss:$16 sps:$4 sm:$0xff]  }
 0x112   : > { %671 = vmatpush1.bf16.msra.mxu0 %v3689_v33  ;;  %v3763_v33 = vld [vmem:[%s5400_s7 + $0x168] ss:$16 sps:$4 sm:$0xff]  }
 0x113   : > { %672 = vmatprep.subr.bf16.mxu0 %v3694_v34  ;;  %v3771_v34 = vld [vmem:[%s5400_s7 + $0x18c] ss:$16 sps:$4 sm:$0xff]  }
 0x116   : > { %673 = vmatpush1.bf16.msra.mxu0 %v3692_v35  ;;  %v3769_v35 = vld [vmem:[%s5400_s7 + $0x188] ss:$16 sps:$4 sm:$0xff]  }
 0x117   : > { %1156 = vmatprep.subr.bf16.mxu0 %v3699_v38  ;;  %v3778_v38 = vld [vmem:[%s5400_s7 + $0x1a0] ss:$16 sps:$4 sm:$0xff]  }
 0x118   : > { %1140 = vmatpush1.bf16.msra.mxu1 %v3778_v38  ;;  %v3839_v38 = vld [vmem:[%s5402_s9 + $0x1c0] ss:$28 sps:$4 sm:$0xff]  }
 0x119   : > { %1141 = vmatprep.subr.bf16.mxu1 %v3779_v39  ;;  %v3842_v39 = vld [vmem:[%s5402_s9 + $0x1c8] ss:$28 sps:$4 sm:$0xff]  }
 0x11c   : > { %1142 = vmatpush1.bf16.msra.mxu1 %v3784_v42  ;;  %v3845_v42 = vld [vmem:[%s5402_s9 + $0x1f8] ss:$28 sps:$4 sm:$0xff]  }
 0x11d   : > { %1143 = vmatprep.subr.bf16.mxu1 %v3785_v43  ;;  %v3848_v43 = vld [vmem:[%s5402_s9 + $0x200] ss:$28 sps:$4 sm:$0xff]  }
 0x120   : > { %1144 = vmatpush1.bf16.msra.mxu1 %v3790_v46  ;;  %v3851_v46 = vld [vmem:[%s5402_s9 + $0x230] ss:$28 sps:$4 sm:$0xff]  }
 0x121   : > { %2656 = vmatprep.subr.bf16.mxu1 %v3793_v47  ;;  %v3854_v47 = vld [vmem:[%s5402_s9 + $0x238] ss:$28 sps:$4 sm:$0xff]  }
 0x1cc   : > { %v540_v2 = vpop.f32.mrb[4].mxu0 }
 0x1cd   : > { %v541_v3 = vadd.f32 %v3192_v1, %v540_v2  ;;  %v3593_v4 = vpop.f32.mrb[5].mxu0 }
 0x1ce   : > { %v543_v5 = vpop.f32.mrb[6].mxu0 }
 0x1cf   : > { %v544_v6 = vadd.f32 %v3192_v1, %v543_v5  ;;  %v3594_v7 = vpop.f32.mrb[7].mxu0  ;;  %v547_v8 = vmax.f32 %v541_v3, 0.0 }
 0x1d0   : > { %v3794_v7 = vld [vmem:[%s5402_s9 + $0x8] ss:$28 sps:$4 sm:$0xff]  }
 0x1d1   : > { %v548_v9 = vmax.f32 %v544_v6, 0.0  ;;  %v3791_v6 = vld [vmem:[%s5402_s9] ss:$28 sps:$4 sm:$0xff]  }
 0x1d3   : > { %v549_v11 = vpack.c.bf16 %v548_v9, %v547_v8  ;;  %v3799_v8 = vld [vmem:[%s5402_s9 + $0x3c] ss:$28 sps:$4 sm:$0xff]   ;;  %v3802_v9 = vld [vmem:[%s5402_s9 + $0x44] ss:$28 sps:$4 sm:$0xff]  }
 0x1d5   : > { %691 = vmatmul.mubr.bf16.vlgmr.msra.gmra.mrb[8].mxu0 %v549_v11  ;;  %v3800_v11 = vld [vmem:[%s5402_s9 + $0x40] ss:$28 sps:$4 sm:$0xff]  }
 0x1d6   : > { %1157 = vmatpush1.bf16.msra.mxu0 %v3697_v10  ;;  %v3797_v10 = vld [vmem:[%s5402_s9 + $0x38] ss:$28 sps:$4 sm:$0xff]  }
 0x1d7   : > { %1158 = vmatprep.subr.bf16.mxu0 %v3705_v12  ;;  %v3805_v12 = vld [vmem:[%s5402_s9 + $0x74] ss:$28 sps:$4 sm:$0xff]  }
 0x1da   : > { %1159 = vmatpush1.bf16.msra.mxu0 %v3703_v13  ;;  %v3808_v13 = vld [vmem:[%s5402_s9 + $0x7c] ss:$28 sps:$4 sm:$0xff]  }
 0x1db   : > { %1160 = vmatprep.subr.bf16.mxu0 %v3711_v14  ;;  %v3803_v14 = vld [vmem:[%s5402_s9 + $0x70] ss:$28 sps:$4 sm:$0xff]  }
 0x1de   : > { %1161 = vmatpush1.bf16.msra.mxu0 %v3709_v15  ;;  %v3806_v15 = vld [vmem:[%s5402_s9 + $0x78] ss:$28 sps:$4 sm:$0xff]  }
 0x1df   : > { %1162 = vmatprep.subr.bf16.mxu0 %v3717_v16  ;;  %v3811_v16 = vld [vmem:[%s5402_s9 + $0xac] ss:$28 sps:$4 sm:$0xff]  }
 0x1e2   : > { %1163 = vmatpush1.bf16.msra.mxu0 %v3715_v17  ;;  %v3814_v17 = vld [vmem:[%s5402_s9 + $0xb4] ss:$28 sps:$4 sm:$0xff]  }
 0x1e3   : > { %1164 = vmatprep.subr.bf16.mxu0 %v3723_v18  ;;  %v3809_v18 = vld [vmem:[%s5402_s9 + $0xa8] ss:$28 sps:$4 sm:$0xff]  }
 0x1e6   : > { %1165 = vmatpush1.bf16.msra.mxu0 %v3721_v19  ;;  %v3812_v19 = vld [vmem:[%s5402_s9 + $0xb0] ss:$28 sps:$4 sm:$0xff]  }
 0x1e7   : > { %1166 = vmatprep.subr.bf16.mxu0 %v3729_v20  ;;  %v3817_v20 = vld [vmem:[%s5402_s9 + $0xe4] ss:$28 sps:$4 sm:$0xff]  }
 0x1ea   : > { %1167 = vmatpush1.bf16.msra.mxu0 %v3727_v21  ;;  %v3820_v21 = vld [vmem:[%s5402_s9 + $0xec] ss:$28 sps:$4 sm:$0xff]  }
 0x1eb   : > { %1168 = vmatprep.subr.bf16.mxu0 %v3735_v22  ;;  %v3815_v22 = vld [vmem:[%s5402_s9 + $0xe0] ss:$28 sps:$4 sm:$0xff]  }
 0x1ee   : > { %1169 = vmatpush1.bf16.msra.mxu0 %v3733_v23  ;;  %v3818_v23 = vld [vmem:[%s5402_s9 + $0xe8] ss:$28 sps:$4 sm:$0xff]  }
 0x1ef   : > { %1170 = vmatprep.subr.bf16.mxu0 %v3741_v24  ;;  %v3823_v24 = vld [vmem:[%s5402_s9 + $0x11c] ss:$28 sps:$4 sm:$0xff]  }
 0x1f2   : > { %1171 = vmatpush1.bf16.msra.mxu0 %v3739_v25  ;;  %v3826_v25 = vld [vmem:[%s5402_s9 + $0x124] ss:$28 sps:$4 sm:$0xff]  }
 0x1f3   : > { %1172 = vmatprep.subr.bf16.mxu0 %v3747_v26  ;;  %v3821_v26 = vld [vmem:[%s5402_s9 + $0x118] ss:$28 sps:$4 sm:$0xff]  }
 0x1f6   : > { %1173 = vmatpush1.bf16.msra.mxu0 %v3745_v27  ;;  %v3824_v27 = vld [vmem:[%s5402_s9 + $0x120] ss:$28 sps:$4 sm:$0xff]  }
 0x1f7   : > { %1174 = vmatprep.subr.bf16.mxu0 %v3753_v28  ;;  %v3829_v28 = vld [vmem:[%s5402_s9 + $0x154] ss:$28 sps:$4 sm:$0xff]  }
 0x1fa   : > { %1175 = vmatpush1.bf16.msra.mxu0 %v3751_v29  ;;  %v3832_v29 = vld [vmem:[%s5402_s9 + $0x15c] ss:$28 sps:$4 sm:$0xff]  }
 0x1fb   : > { %1176 = vmatprep.subr.bf16.mxu0 %v3759_v30  ;;  %v3827_v30 = vld [vmem:[%s5402_s9 + $0x150] ss:$28 sps:$4 sm:$0xff]  }
 0x1fe   : > { %1177 = vmatpush1.bf16.msra.mxu0 %v3757_v31  ;;  %v3830_v31 = vld [vmem:[%s5402_s9 + $0x158] ss:$28 sps:$4 sm:$0xff]  }
 0x1ff   : > { %1178 = vmatprep.subr.bf16.mxu0 %v3765_v32  ;;  %v3835_v32 = vld [vmem:[%s5402_s9 + $0x18c] ss:$28 sps:$4 sm:$0xff]  }
 0x202   : > { %1179 = vmatpush1.bf16.msra.mxu0 %v3763_v33  ;;  %v3838_v33 = vld [vmem:[%s5402_s9 + $0x194] ss:$28 sps:$4 sm:$0xff]  }
 0x203   : > { %1180 = vmatprep.subr.bf16.mxu0 %v3771_v34  ;;  %v3833_v34 = vld [vmem:[%s5402_s9 + $0x188] ss:$28 sps:$4 sm:$0xff]  }
 0x206   : > { %1181 = vmatpush1.bf16.msra.mxu0 %v3769_v35  ;;  %v3836_v35 = vld [vmem:[%s5402_s9 + $0x190] ss:$28 sps:$4 sm:$0xff]  }
 0x207   : > { %1182 = vmatprep.subr.bf16.mxu0 %v3777_v36  ;;  %v3841_v36 = vld [vmem:[%s5402_s9 + $0x1c4] ss:$28 sps:$4 sm:$0xff]  }
 0x20a   : > { %1183 = vmatpush1.bf16.msra.mxu0 %v3775_v37  ;;  %v3844_v37 = vld [vmem:[%s5402_s9 + $0x1cc] ss:$28 sps:$4 sm:$0xff]  }
 0x20b   : > { %1184 = vmatprep.subr.bf16.mxu0 %v3783_v40  ;;  %v3847_v40 = vld [vmem:[%s5402_s9 + $0x1fc] ss:$28 sps:$4 sm:$0xff]  }
 0x20e   : > { %1185 = vmatpush1.bf16.msra.mxu0 %v3781_v41  ;;  %v3850_v41 = vld [vmem:[%s5402_s9 + $0x204] ss:$28 sps:$4 sm:$0xff]  }
 0x20f   : > { %1186 = vmatprep.subr.bf16.mxu0 %v3789_v44  ;;  %v3853_v44 = vld [vmem:[%s5402_s9 + $0x234] ss:$28 sps:$4 sm:$0xff]  }
 0x212   : > { %1187 = vmatpush1.bf16.msra.mxu0 %v3787_v45  ;;  %v3856_v45 = vld [vmem:[%s5402_s9 + $0x23c] ss:$28 sps:$4 sm:$0xff]  }
 0x213   : > { %2742 = vmatprep.subr.bf16.mxu0 %v3796_v48  ;;  %v3859_v48 = vld [vmem:[%s5402_s9 + $0x26c] ss:$28 sps:$4 sm:$0xff]  }
 0x2a8   : > { %v692_v56 = vpop.f32.mrb[8].mxu0 }
 0x2a9   : > { %v693_v57 = vadd.f32 %v692_v56, %v571_v54  ;;  %v694_v58 = vpop.f32.mrb[9].mxu0  ;;  %v3868_v56 = vld [vmem:[%s5402_s9 + $0x2ac] ss:$28 sps:$4 sm:$0xff]  }
 0x2aa   : > { %v695_v59 = vadd.f32 %v694_v58, %v575_v55  ;;  %v696_v60 = vpop.f32.mrb[10].mxu0  ;;  %v3866_v58 = vld [vmem:[%s5402_s9 + $0x2a8] ss:$28 sps:$4 sm:$0xff]  }
 0x2ab   : > { %v697_v61 = vadd.f32 %v696_v60, %v571_v54  ;;  %v698_v62 = vpop.f32.mrb[11].mxu0  ;;  %v701_v0 = vmax.f32 %v693_v57, 0.0  ;;  %v3860_v54 = vld [vmem:[%s5402_s9 + $0x270] ss:$28 sps:$4 sm:$0xff]   ;;  %v3863_v57 = vld [vmem:[%s5402_s9 + $0x2a0] ss:$28 sps:$4 sm:$0xff]  }
 0x2ac   : > { %v699_v63 = vadd.f32 %v698_v62, %v575_v55  ;;  %v702_v2 = vmax.f32 %v695_v59, 0.0  ;;  %v3865_v55 = vld [vmem:[%s5402_s9 + $0x2a4] ss:$28 sps:$4 sm:$0xff]   ;;  %v3871_v59 = vld [vmem:[%s5402_s9 + $0x2dc] ss:$28 sps:$4 sm:$0xff]  }
 0x2ad   : > { %v703_v1 = vmax.f32 %v697_v61, 0.0  ;;  %v3874_v60 = vld [vmem:[%s5402_s9 + $0x2e4] ss:$28 sps:$4 sm:$0xff]   ;;  %v3869_v61 = vld [vmem:[%s5402_s9 + $0x2d8] ss:$28 sps:$4 sm:$0xff]  }
 0x2ae   : > { %v704_v3 = vmax.f32 %v699_v63, 0.0  ;;  %v3872_v62 = vld [vmem:[%s5402_s9 + $0x2e0] ss:$28 sps:$4 sm:$0xff]   ;;  %v3877_v63 = vld [vmem:[%s5402_s9 + $0x314] ss:$28 sps:$4 sm:$0xff]  }
 0x2af   : > { %v705_v4 = vpack.c.bf16 %v703_v1, %v701_v0  ;;  %v3880_v0 = vld [vmem:[%s5402_s9 + $0x31c] ss:$28 sps:$4 sm:$0xff]   ;;  %v3875_v1 = vld [vmem:[%s5402_s9 + $0x310] ss:$28 sps:$4 sm:$0xff]  }
 0x2b0   : > { %v706_v5 = vpack.c.bf16 %v704_v3, %v702_v2  ;;  %v3878_v2 = vld [vmem:[%s5402_s9 + $0x318] ss:$28 sps:$4 sm:$0xff]   ;;  %v3883_v3 = vld [vmem:[%s5402_s9 + $0x34c] ss:$28 sps:$4 sm:$0xff]  }
 0x2b2   : > { %1145 = vmatprep.mubr.bf16.mxu1 %v706_v5  ;;  %1188 = vmatprep.mubr.bf16.mxu0 %v706_v5  ;;  %v3881_v5 = vld [vmem:[%s5402_s9 + $0x348] ss:$28 sps:$4 sm:$0xff]  }
 0x2b3   : > { %1146 = vmatmul.mubr.bf16.vlgmr.msra.gmra.mrb[0].mxu1 %v705_v4  ;;  %1189 = vmatmul.mubr.bf16.vlgmr.msra.gmra.mrb[12].mxu0 %v705_v4  ;;  %v3886_v4 = vld [vmem:[%s5402_s9 + $0x354] ss:$28 sps:$4 sm:$0xff]  }
 0x2b4   : > { %2657 = vmatpush1.bf16.msra.mxu1 %v3791_v6  ;;  %2743 = vmatpush1.bf16.msra.mxu0 %v3794_v7  ;;  %v3884_v6 = vld [vmem:[%s5402_s9 + $0x350] ss:$28 sps:$4 sm:$0xff]   ;;  %v3889_v7 = vld [vmem:[%s5402_s9 + $0x384] ss:$28 sps:$4 sm:$0xff]  }
 0x2b5   : > { %2658 = vmatprep.subr.bf16.mxu1 %v3799_v8  ;;  %2744 = vmatprep.subr.bf16.mxu0 %v3802_v9  ;;  %v3892_v8 = vld [vmem:[%s5402_s9 + $0x38c] ss:$28 sps:$4 sm:$0xff]   ;;  %v783_v9 = vsub.s32 2, %v4593_v50 }
 0x2b8   : > { %2659 = vmatpush1.bf16.msra.mxu1 %v3797_v10  ;;  %2745 = vmatpush1.bf16.msra.mxu0 %v3800_v11  ;;  %v771_v10 = vld [vmem:[%s5401_s8] sm:$0xf]  ;;  %v787_v11 = vsub.s32 3, %v4593_v50 }
 0x2b9   : > { %2660 = vmatprep.subr.bf16.mxu1 %v3805_v12  ;;  %2746 = vmatprep.subr.bf16.mxu0 %v3808_v13  ;;  %v776_v12 = vrot.slane %v771_v10, %v4596_v51  ;;  %v784_v13 = vrot.slane %v771_v10, %v783_v9 }
 0x2bc   : > { %2661 = vmatpush1.bf16.msra.mxu1 %v3803_v14  ;;  %2747 = vmatpush1.bf16.msra.mxu0 %v3806_v15  ;;  %v780_v14 = vrot.slane %v771_v10, %v4602_v53  ;;  %v788_v15 = vrot.slane %v771_v10, %v787_v11  ;;  %v3931_v10 = vld [vmem:[%s5402_s9 + $0x50c] ss:$28 sps:$4 sm:$0xff]  }
 0x2bd   : > { %2662 = vmatprep.subr.bf16.mxu1 %v3811_v16  ;;  %2748 = vmatprep.subr.bf16.mxu0 %v3814_v17 }
 0x2c0   : > { %2663 = vmatpush1.bf16.msra.mxu1 %v3809_v18  ;;  %2749 = vmatpush1.bf16.msra.mxu0 %v3812_v19 }
 0x2c1   : > { %2664 = vmatprep.subr.bf16.mxu1 %v3817_v20  ;;  %2750 = vmatprep.subr.bf16.mxu0 %v3820_v21 }
 0x2c4   : > { %2665 = vmatpush1.bf16.msra.mxu1 %v3815_v22  ;;  %2751 = vmatpush1.bf16.msra.mxu0 %v3818_v23 }
 0x2c5   : > { %2666 = vmatprep.subr.bf16.mxu1 %v3823_v24  ;;  %2752 = vmatprep.subr.bf16.mxu0 %v3826_v25 }
 0x2c8   : > { %2667 = vmatpush1.bf16.msra.mxu1 %v3821_v26  ;;  %2753 = vmatpush1.bf16.msra.mxu0 %v3824_v27 }
 0x2c9   : > { %2668 = vmatprep.subr.bf16.mxu1 %v3829_v28  ;;  %2754 = vmatprep.subr.bf16.mxu0 %v3832_v29 }
 0x2cc   : > { %2669 = vmatpush1.bf16.msra.mxu1 %v3827_v30  ;;  %2755 = vmatpush1.bf16.msra.mxu0 %v3830_v31 }
 0x2cd   : > { %2670 = vmatprep.subr.bf16.mxu1 %v3835_v32  ;;  %2756 = vmatprep.subr.bf16.mxu0 %v3838_v33 }
 0x2d0   : > { %2671 = vmatpush1.bf16.msra.mxu1 %v3833_v34  ;;  %2757 = vmatpush1.bf16.msra.mxu0 %v3836_v35 }
 0x2d1   : > { %2672 = vmatprep.subr.bf16.mxu1 %v3841_v36  ;;  %2758 = vmatprep.subr.bf16.mxu0 %v3844_v37 }
 0x2d4   : > { %2673 = vmatpush1.bf16.msra.mxu1 %v3839_v38  ;;  %2759 = vmatpush1.bf16.msra.mxu0 %v3842_v39 }
 0x2d5   : > { %2674 = vmatprep.subr.bf16.mxu1 %v3847_v40  ;;  %2760 = vmatprep.subr.bf16.mxu0 %v3850_v41 }
 0x2d8   : > { %2675 = vmatpush1.bf16.msra.mxu1 %v3845_v42  ;;  %2761 = vmatpush1.bf16.msra.mxu0 %v3848_v43 }
 0x2d9   : > { %2676 = vmatprep.subr.bf16.mxu1 %v3853_v44  ;;  %2762 = vmatprep.subr.bf16.mxu0 %v3856_v45  ;;  %v3887_v44 = vld [vmem:[%s5402_s9 + $0x380] ss:$28 sps:$4 sm:$0xff]   ;;  %v3890_v45 = vld [vmem:[%s5402_s9 + $0x388] ss:$28 sps:$4 sm:$0xff]  }
 0x2dc   : > { %2677 = vmatpush1.bf16.msra.mxu1 %v3851_v46  ;;  %2763 = vmatpush1.bf16.msra.mxu0 %v3854_v47  ;;  %v3895_v46 = vld [vmem:[%s5402_s9 + $0x3bc] ss:$28 sps:$4 sm:$0xff]   ;;  %v3898_v47 = vld [vmem:[%s5402_s9 + $0x3c4] ss:$28 sps:$4 sm:$0xff]  }
 0x2dd   : > { %2678 = vmatprep.subr.bf16.mxu1 %v3859_v48  ;;  %2764 = vmatprep.subr.bf16.mxu0 %v3862_v49  ;;  %v3893_v48 = vld [vmem:[%s5402_s9 + $0x3b8] ss:$28 sps:$4 sm:$0xff]   ;;  %v3896_v49 = vld [vmem:[%s5402_s9 + $0x3c0] ss:$28 sps:$4 sm:$0xff]  }
 0x2e0   : > { %2679 = vmatpush1.bf16.msra.mxu1 %v3857_v52  ;;  %2765 = vmatpush1.bf16.msra.mxu0 %v3860_v54  ;;  %v3901_v52 = vld [vmem:[%s5402_s9 + $0x3f4] ss:$28 sps:$4 sm:$0xff]   ;;  %v3904_v54 = vld [vmem:[%s5402_s9 + $0x3fc] ss:$28 sps:$4 sm:$0xff]  }
 0x2e1   : > { %2680 = vmatprep.subr.bf16.mxu1 %v3865_v55  ;;  %2766 = vmatprep.subr.bf16.mxu0 %v3868_v56  ;;  %v3899_v55 = vld [vmem:[%s5402_s9 + $0x3f0] ss:$28 sps:$4 sm:$0xff]   ;;  %v3902_v56 = vld [vmem:[%s5402_s9 + $0x3f8] ss:$28 sps:$4 sm:$0xff]  }
 0x2e4   : > { %2681 = vmatpush1.bf16.msra.mxu1 %v3863_v57  ;;  %2767 = vmatpush1.bf16.msra.mxu0 %v3866_v58  ;;  %v3907_v57 = vld [vmem:[%s5402_s9 + $0x42c] ss:$28 sps:$4 sm:$0xff]   ;;  %v3910_v58 = vld [vmem:[%s5402_s9 + $0x434] ss:$28 sps:$4 sm:$0xff]  }
 0x2e5   : > { %2682 = vmatprep.subr.bf16.mxu1 %v3871_v59  ;;  %2768 = vmatprep.subr.bf16.mxu0 %v3874_v60  ;;  %v3905_v59 = vld [vmem:[%s5402_s9 + $0x428] ss:$28 sps:$4 sm:$0xff]   ;;  %v3908_v60 = vld [vmem:[%s5402_s9 + $0x430] ss:$28 sps:$4 sm:$0xff]  }
 0x2e8   : > { %2683 = vmatpush1.bf16.msra.mxu1 %v3869_v61  ;;  %2769 = vmatpush1.bf16.msra.mxu0 %v3872_v62  ;;  %v3913_v61 = vld [vmem:[%s5402_s9 + $0x464] ss:$28 sps:$4 sm:$0xff]   ;;  %v3916_v62 = vld [vmem:[%s5402_s9 + $0x46c] ss:$28 sps:$4 sm:$0xff]  }
 0x2e9   : > { %2684 = vmatprep.subr.bf16.mxu1 %v3877_v63  ;;  %2770 = vmatprep.subr.bf16.mxu0 %v3880_v0  ;;  %v3911_v63 = vld [vmem:[%s5402_s9 + $0x460] ss:$28 sps:$4 sm:$0xff]   ;;  %v3914_v0 = vld [vmem:[%s5402_s9 + $0x468] ss:$28 sps:$4 sm:$0xff]  }
 0x2ec   : > { %2685 = vmatpush1.bf16.msra.mxu1 %v3875_v1  ;;  %2771 = vmatpush1.bf16.msra.mxu0 %v3878_v2  ;;  %v3919_v1 = vld [vmem:[%s5402_s9 + $0x49c] ss:$28 sps:$4 sm:$0xff]   ;;  %v3922_v2 = vld [vmem:[%s5402_s9 + $0x4a4] ss:$28 sps:$4 sm:$0xff]  }
 0x2ed   : > { %2686 = vmatprep.subr.bf16.mxu1 %v3883_v3  ;;  %2772 = vmatprep.subr.bf16.mxu0 %v3886_v4  ;;  %v3917_v3 = vld [vmem:[%s5402_s9 + $0x498] ss:$28 sps:$4 sm:$0xff]   ;;  %v3920_v4 = vld [vmem:[%s5402_s9 + $0x4a0] ss:$28 sps:$4 sm:$0xff]  }
 0x2f0   : > { %2687 = vmatpush1.bf16.msra.mxu1 %v3881_v5  ;;  %2773 = vmatpush1.bf16.msra.mxu0 %v3884_v6  ;;  %v3925_v5 = vld [vmem:[%s5402_s9 + $0x4d4] ss:$28 sps:$4 sm:$0xff]   ;;  %v3928_v6 = vld [vmem:[%s5402_s9 + $0x4dc] ss:$28 sps:$4 sm:$0xff]  }
 0x2f1   : > { %2699 = vmatprep.subr.bf16.mxu1 %v3889_v7  ;;  %2785 = vmatprep.subr.bf16.mxu0 %v3892_v8  ;;  %v3923_v7 = vld [vmem:[%s5402_s9 + $0x4d0] ss:$28 sps:$4 sm:$0xff]   ;;  %v3926_v8 = vld [vmem:[%s5402_s9 + $0x4d8] ss:$28 sps:$4 sm:$0xff]  }
 0x386   : > { %v1147_v16 = vpop.f32.mrb[0].mxu1  ;;  %v1190_v17 = vpop.f32.mrb[12].mxu0 }
 0x387   : > { %v1148_v18 = vadd.f32 %v1147_v16, %v776_v12  ;;  %v1191_v19 = vadd.f32 %v1190_v17, %v784_v13  ;;  %v1149_v20 = vpop.f32.mrb[1].mxu1  ;;  %v1192_v21 = vpop.f32.mrb[13].mxu0  ;;  %v3940_v16 = vld [vmem:[%s5402_s9 + $0x54c] ss:$28 sps:$4 sm:$0xff]   ;;  %v3935_v17 = vld [vmem:[%s5402_s9 + $0x540] ss:$28 sps:$4 sm:$0xff]  }
 0x388   : > { %v1150_v22 = vadd.f32 %v1149_v20, %v780_v14  ;;  %v1193_v23 = vadd.f32 %v1192_v21, %v788_v15  ;;  %v1151_v24 = vpop.f32.mrb[2].mxu1  ;;  %v1194_v25 = vpop.f32.mrb[14].mxu0  ;;  %v3946_v20 = vld [vmem:[%s5402_s9 + $0x584] ss:$28 sps:$4 sm:$0xff]   ;;  %v3941_v21 = vld [vmem:[%s5402_s9 + $0x578] ss:$28 sps:$4 sm:$0xff]  }
 0x389   : > { %v1152_v26 = vadd.f32 %v1151_v24, %v776_v12  ;;  %v1195_v27 = vadd.f32 %v1194_v25, %v784_v13  ;;  %v1153_v28 = vpop.f32.mrb[3].mxu1  ;;  %v1196_v29 = vpop.f32.mrb[15].mxu0  ;;  %v1199_v32 = vmax.f32 %v1148_v18, 0.0  ;;  %v1201_v33 = vmax.f32 %v1191_v19, 0.0  ;;  %v3934_v12 = vld [vmem:[%s5402_s9 + $0x514] ss:$28 sps:$4 sm:$0xff]  }
 0x38a   : > { %v1154_v30 = vadd.f32 %v1153_v28, %v780_v14  ;;  %v1197_v31 = vadd.f32 %v1196_v29, %v788_v15  ;;  %v1200_v36 = vmax.f32 %v1150_v22, 0.0  ;;  %v1202_v37 = vmax.f32 %v1193_v23, 0.0  ;;  %v3929_v13 = vld [vmem:[%s5402_s9 + $0x508] ss:$28 sps:$4 sm:$0xff]   ;;  %v3932_v14 = vld [vmem:[%s5402_s9 + $0x510] ss:$28 sps:$4 sm:$0xff]  }
 0x38b   : > { %v1203_v34 = vmax.f32 %v1152_v26, 0.0  ;;  %v1205_v35 = vmax.f32 %v1195_v27, 0.0  ;;  %v3937_v15 = vld [vmem:[%s5402_s9 + $0x544] ss:$28 sps:$4 sm:$0xff]   ;;  %v3943_v19 = vld [vmem:[%s5402_s9 + $0x57c] ss:$28 sps:$4 sm:$0xff]  }
 0x38c   : > { %v1204_v38 = vmax.f32 %v1154_v30, 0.0  ;;  %v1206_v39 = vmax.f32 %v1197_v31, 0.0  ;;  %v3938_v18 = vld [vmem:[%s5402_s9 + $0x548] ss:$28 sps:$4 sm:$0xff]   ;;  %v3944_v22 = vld [vmem:[%s5402_s9 + $0x580] ss:$28 sps:$4 sm:$0xff]  }
 0x38d   : > { %v4809_v40 = vpack.c.bf16 %v1203_v34, %v1199_v32  ;;  %v4811_v41 = vpack.c.bf16 %v1205_v35, %v1201_v33  ;;  %v3949_v23 = vld [vmem:[%s5402_s9 + $0x5b4] ss:$28 sps:$4 sm:$0xff]   ;;  %v3952_v24 = vld [vmem:[%s5402_s9 + $0x5bc] ss:$28 sps:$4 sm:$0xff]   ;;  %v3955_v27 = vld [vmem:[%s5402_s9 + $0x5ec] ss:$28 sps:$4 sm:$0xff]  }
 0x38e   : > { %v4813_v42 = vpack.c.bf16 %v1204_v38, %v1200_v36  ;;  %v4815_v43 = vpack.c.bf16 %v1206_v39, %v1202_v37  ;;  %v3947_v25 = vld [vmem:[%s5402_s9 + $0x5b0] ss:$28 sps:$4 sm:$0xff]   ;;  %v3950_v26 = vld [vmem:[%s5402_s9 + $0x5b8] ss:$28 sps:$4 sm:$0xff]   ;;  %v3953_v29 = vld [vmem:[%s5402_s9 + $0x5e8] ss:$28 sps:$4 sm:$0xff]  }
 0x38f   : > { %v3958_v28 = vld [vmem:[%s5402_s9 + $0x5f4] ss:$28 sps:$4 sm:$0xff]   ;;  %v3961_v31 = vld [vmem:[%s5402_s9 + $0x624] ss:$28 sps:$4 sm:$0xff]   ;;  %v3964_v32 = vld [vmem:[%s5402_s9 + $0x62c] ss:$28 sps:$4 sm:$0xff]  }
 0x390   : > { %2688 = vmatprep.mubr.bf16.mxu1 %v4813_v42  ;;  %2774 = vmatprep.mubr.bf16.mxu0 %v4813_v42  ;;  %v3956_v30 = vld [vmem:[%s5402_s9 + $0x5f0] ss:$28 sps:$4 sm:$0xff]   ;;  %v3959_v33 = vld [vmem:[%s5402_s9 + $0x620] ss:$28 sps:$4 sm:$0xff]   ;;  %v3962_v34 = vld [vmem:[%s5402_s9 + $0x628] ss:$28 sps:$4 sm:$0xff]  }
 0x391   : > { %2689 = vmatmul.mubr.bf16.vlgmr.msra.gmra.mrb[4].mxu1 %v4809_v40  ;;  %2775 = vmatmul.mubr.bf16.vlgmr.msra.gmra.mrb[16].mxu0 %v4809_v40  ;;  %v3967_v35 = vld [vmem:[%s5402_s9 + $0x65c] ss:$28 sps:$4 sm:$0xff]   ;;  %v3970_v36 = vld [vmem:[%s5402_s9 + $0x664] ss:$28 sps:$4 sm:$0xff]   ;;  %v3973_v39 = vld [vmem:[%s5402_s9 + $0x694] ss:$28 sps:$4 sm:$0xff]  }
 0x392   : > { %2700 = vmatpush1.bf16.msra.mxu1 %v3887_v44  ;;  %2786 = vmatpush1.bf16.msra.mxu0 %v3890_v45  ;;  %v3965_v37 = vld [vmem:[%s5402_s9 + $0x658] ss:$28 sps:$4 sm:$0xff]   ;;  %v3968_v38 = vld [vmem:[%s5402_s9 + $0x660] ss:$28 sps:$4 sm:$0xff]   ;;  %v3971_v45 = vld [vmem:[%s5402_s9 + $0x690] ss:$28 sps:$4 sm:$0xff]  }
 0x393   : > { %2731 = vmatprep.mubr.bf16.mxu1 %v4815_v43  ;;  %2817 = vmatprep.mubr.bf16.mxu0 %v4815_v43  ;;  %v3976_v44 = vld [vmem:[%s5402_s9 + $0x69c] ss:$28 sps:$4 sm:$0xff]  }
 0x394   : > { %2701 = vmatprep.subr.bf16.mxu1 %v3895_v46  ;;  %2787 = vmatprep.subr.bf16.mxu0 %v3898_v47  ;;  %v3974_v46 = vld [vmem:[%s5402_s9 + $0x698] ss:$28 sps:$4 sm:$0xff]   ;;  %v3979_v47 = vld [vmem:[%s5402_s9 + $0x6cc] ss:$28 sps:$4 sm:$0xff]  }
 0x396   : > { %2702 = vmatpush1.bf16.msra.mxu1 %v3893_v48  ;;  %2788 = vmatpush1.bf16.msra.mxu0 %v3896_v49  ;;  %v3982_v48 = vld [vmem:[%s5402_s9 + $0x6d4] ss:$28 sps:$4 sm:$0xff]   ;;  %v3977_v49 = vld [vmem:[%s5402_s9 + $0x6c8] ss:$28 sps:$4 sm:$0xff]  }
 0x397   : > { %2703 = vmatprep.subr.bf16.mxu1 %v3901_v52  ;;  %2789 = vmatprep.subr.bf16.mxu0 %v3904_v54  ;;  %v3980_v52 = vld [vmem:[%s5402_s9 + $0x6d0] ss:$28 sps:$4 sm:$0xff]  }
 0x398   : > { %v3985_v54 = vld [vmem:[%s5402_s9 + $0x14] ss:$28 sps:$4 sm:$0xff]  }
 0x39a   : > { %2704 = vmatpush1.bf16.msra.mxu1 %v3899_v55  ;;  %2790 = vmatpush1.bf16.msra.mxu0 %v3902_v56  ;;  %v3986_v55 = vld [vmem:[%s5402_s9 + $0x1d8] ss:$28 sps:$4 sm:$0xff]   ;;  %v3983_v56 = vld [vmem:[%s5402_s9 + $0x10] ss:$28 sps:$4 sm:$0xff]  }
 0x39b   : > { %2705 = vmatprep.subr.bf16.mxu1 %v3907_v57  ;;  %2791 = vmatprep.subr.bf16.mxu0 %v3910_v58  ;;  %v3987_v57 = vld [vmem:[%s5402_s9 + $0x18] ss:$28 sps:$4 sm:$0xff]   ;;  %v3990_v58 = vld [vmem:[%s5402_s9 + $0x4c] ss:$28 sps:$4 sm:$0xff]  }
 0x39e   : > { %2706 = vmatpush1.bf16.msra.mxu1 %v3905_v59  ;;  %2792 = vmatpush1.bf16.msra.mxu0 %v3908_v60  ;;  %v3991_v59 = vld [vmem:[%s5402_s9 + $0x210] ss:$28 sps:$4 sm:$0xff]   ;;  %v3988_v60 = vld [vmem:[%s5402_s9 + $0x48] ss:$28 sps:$4 sm:$0xff]  }
 0x39f   : > { %2707 = vmatprep.subr.bf16.mxu1 %v3913_v61  ;;  %2793 = vmatprep.subr.bf16.mxu0 %v3916_v62  ;;  %v3992_v61 = vld [vmem:[%s5402_s9 + $0x50] ss:$28 sps:$4 sm:$0xff]   ;;  %v3995_v62 = vld [vmem:[%s5402_s9 + $0x84] ss:$28 sps:$4 sm:$0xff]  }
 0x3a2   : > { %2708 = vmatpush1.bf16.msra.mxu1 %v3911_v63  ;;  %2794 = vmatpush1.bf16.msra.mxu0 %v3914_v0  ;;  %v3996_v63 = vld [vmem:[%s5402_s9 + $0x248] ss:$28 sps:$4 sm:$0xff]   ;;  %v3993_v0 = vld [vmem:[%s5402_s9 + $0x80] ss:$28 sps:$4 sm:$0xff]  }
 0x3a3   : > { %2709 = vmatprep.subr.bf16.mxu1 %v3919_v1  ;;  %2795 = vmatprep.subr.bf16.mxu0 %v3922_v2  ;;  %v4000_v1 = vld [vmem:[%s5402_s9 + $0xbc] ss:$28 sps:$4 sm:$0xff]  }
 0x3a4   : > { %v4001_v2 = vld [vmem:[%s5402_s9 + $0x280] ss:$28 sps:$4 sm:$0xff]  }
 0x3a6   : > { %2710 = vmatpush1.bf16.msra.mxu1 %v3917_v3  ;;  %2796 = vmatpush1.bf16.msra.mxu0 %v3920_v4  ;;  %v3998_v3 = vld [vmem:[%s5402_s9 + $0xb8] ss:$28 sps:$4 sm:$0xff]   ;;  %v4002_v4 = vld [vmem:[%s5402_s9 + $0xc0] ss:$28 sps:$4 sm:$0xff]  }
 0x3a7   : > { %2711 = vmatprep.subr.bf16.mxu1 %v3925_v5  ;;  %2797 = vmatprep.subr.bf16.mxu0 %v3928_v6  ;;  %v4005_v5 = vld [vmem:[%s5402_s9 + $0xf4] ss:$28 sps:$4 sm:$0xff]  }
 0x3a8   : > { %v4006_v6 = vld [vmem:[%s5402_s9 + $0x2b8] ss:$28 sps:$4 sm:$0xff]  }
 0x3aa   : > { %2712 = vmatpush1.bf16.msra.mxu1 %v3923_v7  ;;  %2798 = vmatpush1.bf16.msra.mxu0 %v3926_v8  ;;  %v4003_v7 = vld [vmem:[%s5402_s9 + $0xf0] ss:$28 sps:$4 sm:$0xff]   ;;  %v4007_v8 = vld [vmem:[%s5402_s9 + $0xf8] ss:$28 sps:$4 sm:$0xff]  }
 0x3ab   : > { %2713 = vmatprep.subr.bf16.mxu1 %v3931_v10  ;;  %2799 = vmatprep.subr.bf16.mxu0 %v3934_v12  ;;  %v4010_v10 = vld [vmem:[%s5402_s9 + $0x12c] ss:$28 sps:$4 sm:$0xff]  }
 0x3ac   : > { %v4011_v12 = vld [vmem:[%s5402_s9 + $0x2f0] ss:$28 sps:$4 sm:$0xff]  }
 0x3ae   : > { %2714 = vmatpush1.bf16.msra.mxu1 %v3929_v13  ;;  %2800 = vmatpush1.bf16.msra.mxu0 %v3932_v14  ;;  %v4008_v13 = vld [vmem:[%s5402_s9 + $0x128] ss:$28 sps:$4 sm:$0xff]   ;;  %v4012_v14 = vld [vmem:[%s5402_s9 + $0x130] ss:$28 sps:$4 sm:$0xff]  }
 0x3af   : > { %2715 = vmatprep.subr.bf16.mxu1 %v3937_v15  ;;  %2801 = vmatprep.subr.bf16.mxu0 %v3940_v16  ;;  %v4015_v15 = vld [vmem:[%s5402_s9 + $0x164] ss:$28 sps:$4 sm:$0xff]  }
 0x3b0   : > { %v4016_v16 = vld [vmem:[%s5402_s9 + $0x328] ss:$28 sps:$4 sm:$0xff]  }
 0x3b2   : > { %2716 = vmatpush1.bf16.msra.mxu1 %v3935_v17  ;;  %2802 = vmatpush1.bf16.msra.mxu0 %v3938_v18  ;;  %v4013_v17 = vld [vmem:[%s5402_s9 + $0x160] ss:$28 sps:$4 sm:$0xff]   ;;  %v4017_v18 = vld [vmem:[%s5402_s9 + $0x168] ss:$28 sps:$4 sm:$0xff]  }
 0x3b3   : > { %2717 = vmatprep.subr.bf16.mxu1 %v3943_v19  ;;  %2803 = vmatprep.subr.bf16.mxu0 %v3946_v20  ;;  %v4020_v19 = vld [vmem:[%s5402_s9 + $0x19c] ss:$28 sps:$4 sm:$0xff]  }
 0x3b4   : > { %v4021_v20 = vld [vmem:[%s5402_s9 + $0x360] ss:$28 sps:$4 sm:$0xff]  }
 0x3b6   : > { %2718 = vmatpush1.bf16.msra.mxu1 %v3941_v21  ;;  %2804 = vmatpush1.bf16.msra.mxu0 %v3944_v22  ;;  %v4018_v21 = vld [vmem:[%s5402_s9 + $0x198] ss:$28 sps:$4 sm:$0xff]   ;;  %v4022_v22 = vld [vmem:[%s5402_s9 + $0x1a0] ss:$28 sps:$4 sm:$0xff]  }
 0x3b7   : > { %2719 = vmatprep.subr.bf16.mxu1 %v3949_v23  ;;  %2805 = vmatprep.subr.bf16.mxu0 %v3952_v24  ;;  %v4025_v23 = vld [vmem:[%s5402_s9 + $0x1d4] ss:$28 sps:$4 sm:$0xff]  }
 0x3b8   : > { %v4026_v24 = vld [vmem:[%s5402_s9 + $0x558] ss:$28 sps:$4 sm:$0xff]  }
 0x3ba   : > { %2720 = vmatpush1.bf16.msra.mxu1 %v3947_v25  ;;  %2806 = vmatpush1.bf16.msra.mxu0 %v3950_v26  ;;  %v4023_v25 = vld [vmem:[%s5402_s9 + $0x1d0] ss:$28 sps:$4 sm:$0xff]   ;;  %v4027_v26 = vld [vmem:[%s5402_s9 + $0x398] ss:$28 sps:$4 sm:$0xff]  }
 0x3bb   : > { %2721 = vmatprep.subr.bf16.mxu1 %v3955_v27  ;;  %2807 = vmatprep.subr.bf16.mxu0 %v3958_v28  ;;  %v4030_v27 = vld [vmem:[%s5402_s9 + $0x20c] ss:$28 sps:$4 sm:$0xff]  }
 0x3bc   : > { %v4031_v28 = vld [vmem:[%s5402_s9 + $0x590] ss:$28 sps:$4 sm:$0xff]  }
 0x3be   : > { %2722 = vmatpush1.bf16.msra.mxu1 %v3953_v29  ;;  %2808 = vmatpush1.bf16.msra.mxu0 %v3956_v30  ;;  %v4028_v29 = vld [vmem:[%s5402_s9 + $0x208] ss:$28 sps:$4 sm:$0xff]   ;;  %v4032_v30 = vld [vmem:[%s5402_s9 + $0x3d0] ss:$28 sps:$4 sm:$0xff]  }
 0x3bf   : > { %2723 = vmatprep.subr.bf16.mxu1 %v3961_v31  ;;  %2809 = vmatprep.subr.bf16.mxu0 %v3964_v32  ;;  %v4035_v31 = vld [vmem:[%s5402_s9 + $0x244] ss:$28 sps:$4 sm:$0xff]  }
 0x3c0   : > { %v4036_v32 = vld [vmem:[%s5402_s9 + $0x5c8] ss:$28 sps:$4 sm:$0xff]  }
 0x3c2   : > { %2724 = vmatpush1.bf16.msra.mxu1 %v3959_v33  ;;  %2810 = vmatpush1.bf16.msra.mxu0 %v3962_v34  ;;  %v4033_v33 = vld [vmem:[%s5402_s9 + $0x240] ss:$28 sps:$4 sm:$0xff]   ;;  %v4037_v34 = vld [vmem:[%s5402_s9 + $0x408] ss:$28 sps:$4 sm:$0xff]  }
 0x3c3   : > { %2725 = vmatprep.subr.bf16.mxu1 %v3967_v35  ;;  %2811 = vmatprep.subr.bf16.mxu0 %v3970_v36  ;;  %v4040_v35 = vld [vmem:[%s5402_s9 + $0x27c] ss:$28 sps:$4 sm:$0xff]  }
 0x3c4   : > { %v4041_v36 = vld [vmem:[%s5402_s9 + $0x600] ss:$28 sps:$4 sm:$0xff]  }
 0x3c6   : > { %2726 = vmatpush1.bf16.msra.mxu1 %v3965_v37  ;;  %2812 = vmatpush1.bf16.msra.mxu0 %v3968_v38  ;;  %v4038_v37 = vld [vmem:[%s5402_s9 + $0x278] ss:$28 sps:$4 sm:$0xff]   ;;  %v4042_v38 = vld [vmem:[%s5402_s9 + $0x440] ss:$28 sps:$4 sm:$0xff]  }
 0x3c7   : > { %2727 = vmatprep.subr.bf16.mxu1 %v3973_v39  ;;  %2813 = vmatprep.subr.bf16.mxu0 %v3976_v44  ;;  %v4045_v39 = vld [vmem:[%s5402_s9 + $0x2b4] ss:$28 sps:$4 sm:$0xff]  }
 0x3c8   : > { %v4046_v44 = vld [vmem:[%s5402_s9 + $0x638] ss:$28 sps:$4 sm:$0xff]  }
 0x3ca   : > { %2728 = vmatpush1.bf16.msra.mxu1 %v3971_v45  ;;  %2814 = vmatpush1.bf16.msra.mxu0 %v3974_v46  ;;  %v4043_v45 = vld [vmem:[%s5402_s9 + $0x2b0] ss:$28 sps:$4 sm:$0xff]   ;;  %v4047_v46 = vld [vmem:[%s5402_s9 + $0x478] ss:$28 sps:$4 sm:$0xff]  }
 0x3cb   : > { %2729 = vmatprep.subr.bf16.mxu1 %v3979_v47  ;;  %2815 = vmatprep.subr.bf16.mxu0 %v3982_v48  ;;  %v4050_v47 = vld [vmem:[%s5402_s9 + $0x2ec] ss:$28 sps:$4 sm:$0xff]  }
 0x3cc   : > { %v4051_v48 = vld [vmem:[%s5402_s9 + $0x670] ss:$28 sps:$4 sm:$0xff]  }
 0x3ce   : > { %2730 = vmatpush1.bf16.msra.mxu1 %v3977_v49  ;;  %2816 = vmatpush1.bf16.msra.mxu0 %v3980_v52  ;;  %v4048_v49 = vld [vmem:[%s5402_s9 + $0x2e8] ss:$28 sps:$4 sm:$0xff]   ;;  %v4052_v52 = vld [vmem:[%s5402_s9 + $0x4b0] ss:$28 sps:$4 sm:$0xff]  }
 0x3cf   : > { %2828 = vmatprep.subr.bf16.mxu1 %v3985_v54  ;;  %3531 = vmatprep.subr.bf16.mxu0 %v3986_v55  ;;  %v4055_v54 = vld [vmem:[%s5402_s9 + $0x324] ss:$28 sps:$4 sm:$0xff]  }
 0x3d0   : > { %v4056_v55 = vld [vmem:[%s5402_s9 + $0x6a8] ss:$28 sps:$4 sm:$0xff]  }
 0x3d1   : > { %2732 = vmatmul.mubr.bf16.vlgmr.msra.gmra.mrb[4].mxu1 %v4811_v41  ;;  %2818 = vmatmul.mubr.bf16.vlgmr.msra.gmra.mrb[16].mxu0 %v4811_v41 }
 0x3d2   : > { %2829 = vmatpush1.bf16.msra.mxu1 %v3983_v56  ;;  %2860 = vmatprep.mubr.bf16.mxu1 %v4813_v42  ;;  %v4053_v56 = vld [vmem:[%s5402_s9 + $0x320] ss:$28 sps:$4 sm:$0xff]  }
 0x3d3   : > { %3532 = vmatpush3.bf16.msra.mxu0 %v3987_v57  ;;  %2946 = vmatprep.mubr.bf16.mxu0 %v4813_v42  ;;  %v3997_v42 = vld [vmem:[%s5402_s9 + $0x88] ss:$28 sps:$4 sm:$0xff]  }
 0x3d4   : > { %2830 = vmatprep.subr.bf16.mxu1 %v3990_v58  ;;  %3533 = vmatprep.subr.bf16.mxu0 %v3991_v59  ;;  %v4057_v57 = vld [vmem:[%s5402_s9 + $0x4e8] ss:$28 sps:$4 sm:$0xff]   ;;  %v4060_v58 = vld [vmem:[%s5402_s9 + $0x35c] ss:$28 sps:$4 sm:$0xff]  }
 0x3d5   : > { %v4061_v59 = vld [vmem:[%s5402_s9 + $0x6e0] ss:$28 sps:$4 sm:$0xff]  }
 0x3d6   : > { %2831 = vmatpush1.bf16.msra.mxu1 %v3988_v60  ;;  %v4058_v60 = vld [vmem:[%s5402_s9 + $0x358] ss:$28 sps:$4 sm:$0xff]  }
 0x3d7   : > { %3534 = vmatpush3.bf16.msra.mxu0 %v3992_v61  ;;  %2832 = vmatprep.subr.bf16.mxu1 %v3995_v62  ;;  %v4062_v61 = vld [vmem:[%s5402_s9 + $0x520] ss:$28 sps:$4 sm:$0xff]   ;;  %v4065_v62 = vld [vmem:[%s5402_s9 + $0x394] ss:$28 sps:$4 sm:$0xff]  }
 0x3d8   : > { %3535 = vmatprep.subr.bf16.mxu0 %v3996_v63  ;;  %v4063_v63 = vld [vmem:[%s5402_s9 + $0x390] ss:$28 sps:$4 sm:$0xff]  }
 0x3da   : > { %2833 = vmatpush1.bf16.msra.mxu1 %v3993_v0  ;;  %v4068_v0 = vld [vmem:[%s5402_s9 + $0x3cc] ss:$28 sps:$4 sm:$0xff]  }
 0x3db   : > { %3536 = vmatpush3.bf16.msra.mxu0 %v3997_v42  ;;  %2834 = vmatprep.subr.bf16.mxu1 %v4000_v1  ;;  %v4066_v42 = vld [vmem:[%s5402_s9 + $0x3c8] ss:$28 sps:$4 sm:$0xff]  }
 0x3dc   : > { %3537 = vmatprep.subr.bf16.mxu0 %v4001_v2  ;;  %v4071_v1 = vld [vmem:[%s5402_s9 + $0x404] ss:$28 sps:$4 sm:$0xff]  }
 0x3dd   : > { %v4069_v2 = vld [vmem:[%s5402_s9 + $0x400] ss:$28 sps:$4 sm:$0xff]  }
 0x3de   : > { %2835 = vmatpush1.bf16.msra.mxu1 %v3998_v3  ;;  %v4077_v3 = vld [vmem:[%s5402_s9 + $0x474] ss:$28 sps:$4 sm:$0xff]  }
 0x3df   : > { %3538 = vmatpush3.bf16.msra.mxu0 %v4002_v4  ;;  %2836 = vmatprep.subr.bf16.mxu1 %v4005_v5  ;;  %v4075_v4 = vld [vmem:[%s5402_s9 + $0x470] ss:$28 sps:$4 sm:$0xff]  }
 0x3e0   : > { %3539 = vmatprep.subr.bf16.mxu0 %v4006_v6  ;;  %v4080_v5 = vld [vmem:[%s5402_s9 + $0x4ac] ss:$28 sps:$4 sm:$0xff]  }
 0x3e1   : > { %v4078_v6 = vld [vmem:[%s5402_s9 + $0x4a8] ss:$28 sps:$4 sm:$0xff]  }
 0x3e2   : > { %2837 = vmatpush1.bf16.msra.mxu1 %v4003_v7  ;;  %v4083_v7 = vld [vmem:[%s5402_s9 + $0x4e4] ss:$28 sps:$4 sm:$0xff]  }
 0x3e3   : > { %3540 = vmatpush3.bf16.msra.mxu0 %v4007_v8  ;;  %2838 = vmatprep.subr.bf16.mxu1 %v4010_v10  ;;  %v4081_v8 = vld [vmem:[%s5402_s9 + $0x4e0] ss:$28 sps:$4 sm:$0xff]  }
 0x3e4   : > { %3541 = vmatprep.subr.bf16.mxu0 %v4011_v12  ;;  %v4086_v10 = vld [vmem:[%s5402_s9 + $0x51c] ss:$28 sps:$4 sm:$0xff]  }
 0x3e5   : > { %v4084_v12 = vld [vmem:[%s5402_s9 + $0x518] ss:$28 sps:$4 sm:$0xff]  }
 0x3e6   : > { %2839 = vmatpush1.bf16.msra.mxu1 %v4008_v13  ;;  %v4089_v13 = vld [vmem:[%s5402_s9 + $0x554] ss:$28 sps:$4 sm:$0xff]  }
 0x3e7   : > { %3542 = vmatpush3.bf16.msra.mxu0 %v4012_v14  ;;  %2840 = vmatprep.subr.bf16.mxu1 %v4015_v15  ;;  %v4087_v14 = vld [vmem:[%s5402_s9 + $0x550] ss:$28 sps:$4 sm:$0xff]  }
 0x3e8   : > { %3543 = vmatprep.subr.bf16.mxu0 %v4016_v16  ;;  %v4092_v15 = vld [vmem:[%s5402_s9 + $0x58c] ss:$28 sps:$4 sm:$0xff]  }
 0x3e9   : > { %v4090_v16 = vld [vmem:[%s5402_s9 + $0x588] ss:$28 sps:$4 sm:$0xff]  }
 0x3ea   : > { %2841 = vmatpush1.bf16.msra.mxu1 %v4013_v17  ;;  %v4095_v17 = vld [vmem:[%s5402_s9 + $0x5c4] ss:$28 sps:$4 sm:$0xff]  }
 0x3eb   : > { %3544 = vmatpush3.bf16.msra.mxu0 %v4017_v18  ;;  %2842 = vmatprep.subr.bf16.mxu1 %v4020_v19  ;;  %v4093_v18 = vld [vmem:[%s5402_s9 + $0x5c0] ss:$28 sps:$4 sm:$0xff]  }
 0x3ec   : > { %3545 = vmatprep.subr.bf16.mxu0 %v4021_v20  ;;  %v4098_v19 = vld [vmem:[%s5402_s9 + $0x5fc] ss:$28 sps:$4 sm:$0xff]  }
 0x3ed   : > { %v4096_v20 = vld [vmem:[%s5402_s9 + $0x5f8] ss:$28 sps:$4 sm:$0xff]  }
 0x3ee   : > { %2843 = vmatpush1.bf16.msra.mxu1 %v4018_v21  ;;  %v4101_v21 = vld [vmem:[%s5402_s9 + $0x634] ss:$28 sps:$4 sm:$0xff]  }
 0x3ef   : > { %3546 = vmatpush3.bf16.msra.mxu0 %v4022_v22  ;;  %2844 = vmatprep.subr.bf16.mxu1 %v4025_v23  ;;  %v4099_v22 = vld [vmem:[%s5402_s9 + $0x630] ss:$28 sps:$4 sm:$0xff]  }
 0x3f0   : > { %3553 = vmatprep.subr.bf16.mxu0 %v4026_v24  ;;  %v4104_v23 = vld [vmem:[%s5402_s9 + $0x66c] ss:$28 sps:$4 sm:$0xff]  }
 0x3f1   : > { %v4102_v24 = vld [vmem:[%s5402_s9 + $0x668] ss:$28 sps:$4 sm:$0xff]  }
 0x3f2   : > { %2947 = vmatmul.mubr.bf16.vlgmr.msra.gmra.mrb[20].mxu0 %v4809_v40  ;;  %2845 = vmatpush1.bf16.msra.mxu1 %v4023_v25  ;;  %v4107_v25 = vld [vmem:[%s5402_s9 + $0x6a4] ss:$28 sps:$4 sm:$0xff]  }
 0x3f3   : > { %3554 = vmatpush3.bf16.msra.mxu0 %v4027_v26  ;;  %2987 = vmatprep.mubr.bf16.mxu0 %v4815_v43  ;;  %v4105_v26 = vld [vmem:[%s5402_s9 + $0x6a0] ss:$28 sps:$4 sm:$0xff]  }
 0x3f4   : > { %2846 = vmatprep.subr.bf16.mxu1 %v4030_v27  ;;  %3555 = vmatprep.subr.bf16.mxu0 %v4031_v28  ;;  %v4110_v27 = vld [vmem:[%s5402_s9 + $0x6dc] ss:$28 sps:$4 sm:$0xff]  }
 0x3f5   : > { %v4108_v28 = vld [vmem:[%s5402_s9 + $0x6d8] ss:$28 sps:$4 sm:$0xff]  }
 0x3f6   : > { %2847 = vmatpush1.bf16.msra.mxu1 %v4028_v29  ;;  %v5310_v29 = vld [vmem:[%s5403_s10] sm:$0x7f] }
 0x3f7   : > { %3556 = vmatpush3.bf16.msra.mxu0 %v4032_v30  ;;  %2848 = vmatprep.subr.bf16.mxu1 %v4035_v31  ;;  %v1472_v30 = vrot.slane %v5310_v29, %v4596_v51  ;;  %v1480_v31 = vrot.slane %v5310_v29, %v783_v9 }
 0x3f8   : > { %3557 = vmatprep.subr.bf16.mxu0 %v4036_v32  ;;  %v1476_v32 = vrot.slane %v5310_v29, %v4602_v53 }
 0x3fa   : > { %2849 = vmatpush1.bf16.msra.mxu1 %v4033_v33  ;;  %v1484_v33 = vrot.slane %v5310_v29, %v787_v11 }
 0x3fb   : > { %3558 = vmatpush3.bf16.msra.mxu0 %v4037_v34  ;;  %2850 = vmatprep.subr.bf16.mxu1 %v4040_v35 }
 0x3fc   : > { %3559 = vmatprep.subr.bf16.mxu0 %v4041_v36 }
 0x3fe   : > { %2851 = vmatpush1.bf16.msra.mxu1 %v4038_v37 }
 0x3ff   : > { %3560 = vmatpush3.bf16.msra.mxu0 %v4042_v38  ;;  %2852 = vmatprep.subr.bf16.mxu1 %v4045_v39 }
 0x400   : > { %3561 = vmatprep.subr.bf16.mxu0 %v4046_v44 }
 0x402   : > { %2853 = vmatpush1.bf16.msra.mxu1 %v4043_v45 }
 0x403   : > { %3562 = vmatpush3.bf16.msra.mxu0 %v4047_v46  ;;  %2854 = vmatprep.subr.bf16.mxu1 %v4050_v47 }
 0x404   : > { %3563 = vmatprep.subr.bf16.mxu0 %v4051_v48 }
 0x406   : > { %2855 = vmatpush1.bf16.msra.mxu1 %v4048_v49 }
 0x407   : > { %3564 = vmatpush3.bf16.msra.mxu0 %v4052_v52  ;;  %2856 = vmatprep.subr.bf16.mxu1 %v4055_v54 }
 0x408   : > { %3565 = vmatprep.subr.bf16.mxu0 %v4056_v55 }
 0x40a   : > { %2857 = vmatpush1.bf16.msra.mxu1 %v4053_v56 }
 0x40b   : > { %3566 = vmatpush3.bf16.msra.mxu0 %v4057_v57  ;;  %2858 = vmatprep.subr.bf16.mxu1 %v4060_v58 }
 0x40c   : > { %3567 = vmatprep.subr.bf16.mxu0 %v4061_v59 }
 0x40e   : > { %2859 = vmatpush1.bf16.msra.mxu1 %v4058_v60 }
 0x40f   : > { %3568 = vmatpush3.bf16.msra.mxu0 %v4062_v61  ;;  %2871 = vmatprep.subr.bf16.mxu1 %v4065_v62 }
 0x411   : > { %2861 = vmatmul.mubr.bf16.vlgmr.msra.gmra.mrb[8].mxu1 %v4809_v40  ;;  %v4074_v40 = vld [vmem:[%s5402_s9 + $0x43c] ss:$28 sps:$4 sm:$0xff]  }
 0x412   : > { %2988 = vmatmul.mubr.bf16.vlgmr.msra.gmra.mrb[24].mxu0 %v4811_v41  ;;  %2872 = vmatpush1.bf16.msra.mxu1 %v4063_v63 }
 0x413   : > { %2903 = vmatprep.mubr.bf16.mxu1 %v4815_v43  ;;  %2873 = vmatprep.subr.bf16.mxu1 %v4068_v0  ;;  %v4072_v43 = vld [vmem:[%s5402_s9 + $0x438] ss:$28 sps:$4 sm:$0xff]  }
 0x416   : > { %2874 = vmatpush1.bf16.msra.mxu1 %v4066_v42 }
 0x417   : > { %2875 = vmatprep.subr.bf16.mxu1 %v4071_v1 }
 0x41a   : > { %2876 = vmatpush1.bf16.msra.mxu1 %v4069_v2 }
 0x41b   : > { %2877 = vmatprep.subr.bf16.mxu1 %v4074_v40 }
 0x41e   : > { %2878 = vmatpush1.bf16.msra.mxu1 %v4072_v43 }
 0x41f   : > { %2879 = vmatprep.subr.bf16.mxu1 %v4077_v3 }
 0x422   : > { %2880 = vmatpush1.bf16.msra.mxu1 %v4075_v4 }
 0x423   : > { %2881 = vmatprep.subr.bf16.mxu1 %v4080_v5 }
 0x426   : > { %2882 = vmatpush1.bf16.msra.mxu1 %v4078_v6 }
 0x427   : > { %2883 = vmatprep.subr.bf16.mxu1 %v4083_v7 }
 0x42a   : > { %2884 = vmatpush1.bf16.msra.mxu1 %v4081_v8 }
 0x42b   : > { %2885 = vmatprep.subr.bf16.mxu1 %v4086_v10 }
 0x42e   : > { %2886 = vmatpush1.bf16.msra.mxu1 %v4084_v12 }
 0x42f   : > { %2887 = vmatprep.subr.bf16.mxu1 %v4089_v13 }
 0x432   : > { %2888 = vmatpush1.bf16.msra.mxu1 %v4087_v14 }
 0x433   : > { %2889 = vmatprep.subr.bf16.mxu1 %v4092_v15 }
 0x436   : > { %2890 = vmatpush1.bf16.msra.mxu1 %v4090_v16 }
 0x437   : > { %2891 = vmatprep.subr.bf16.mxu1 %v4095_v17 }
 0x43a   : > { %2892 = vmatpush1.bf16.msra.mxu1 %v4093_v18 }
 0x43b   : > { %2893 = vmatprep.subr.bf16.mxu1 %v4098_v19 }
 0x43e   : > { %2894 = vmatpush1.bf16.msra.mxu1 %v4096_v20 }
 0x43f   : > { %2895 = vmatprep.subr.bf16.mxu1 %v4101_v21 }
 0x442   : > { %2896 = vmatpush1.bf16.msra.mxu1 %v4099_v22 }
 0x443   : > { %2897 = vmatprep.subr.bf16.mxu1 %v4104_v23 }
 0x446   : > { %2898 = vmatpush1.bf16.msra.mxu1 %v4102_v24 }
 0x447   : > { %2899 = vmatprep.subr.bf16.mxu1 %v4107_v25 }
 0x44a   : > { %2900 = vmatpush1.bf16.msra.mxu1 %v4105_v26 }
 0x44b   : > { %2901 = vmatprep.subr.bf16.mxu1 %v4110_v27 }
 0x44e   : > { %2902 = vmatpush1.bf16.msra.mxu1 %v4108_v28 }
 0x451   : > { %2904 = vmatmul.mubr.bf16.vlgmr.msra.gmra.mrb[8].mxu1 %v4811_v41 }
 0x4a4   : > { %v2733_v41 = vpop.f32.mrb[4].mxu1  ;;  %v2819_v34 = vpop.f32.mrb[16].mxu0 }
 0x4a5   : > { %v3595_v35 = vadd.f32 %v2733_v41, %v1472_v30  ;;  %v3599_v36 = vadd.f32 %v2819_v34, %v1480_v31  ;;  %v2735_v37 = vpop.f32.mrb[5].mxu1  ;;  %v2821_v38 = vpop.f32.mrb[17].mxu0 }
 0x4a6   : > { %v3596_v39 = vadd.f32 %v2735_v37, %v1476_v32  ;;  %v3600_v44 = vadd.f32 %v2821_v38, %v1484_v33  ;;  %v2737_v51 = vpop.f32.mrb[6].mxu1  ;;  %v2823_v45 = vpop.f32.mrb[18].mxu0 }
 0x4a7   : > { %v2996_v46 = vmul.f32 0.5, %v3595_v35  ;;  %v2998_v47 = vmul.f32 0.5, %v3599_v36  ;;  %v3597_v9 = vadd.f32 %v2737_v51, %v1472_v30  ;;  %v3601_v48 = vadd.f32 %v2823_v45, %v1480_v31  ;;  %v2739_v49 = vpop.f32.mrb[7].mxu1  ;;  %v2825_v53 = vpop.f32.mrb[19].mxu0 }
 0x4a8   : > { %v2997_v52 = vmul.f32 0.5, %v3596_v39  ;;  %v2999_v54 = vmul.f32 0.5, %v3600_v44  ;;  %v3598_v11 = vadd.f32 %v2739_v49, %v1476_v32  ;;  %v3602_v55 = vadd.f32 %v2825_v53, %v1484_v33 }
 0x4a9   : > { %4111 = vtanh.f32 %v2996_v46  ;;  %v3003_v56 = vmul.f32 0.5, %v3597_v9  ;;  %v3005_v57 = vmul.f32 0.5, %v3601_v48  ;;  %v1495_v30 = vsub.s32 6, %v4593_v50 }
 0x4aa   : > { %4113 = vtanh.f32 %v2998_v47  ;;  %v3004_v58 = vmul.f32 0.5, %v3598_v11  ;;  %v3006_v59 = vmul.f32 0.5, %v3602_v55  ;;  %v1487_v11 = vsub.s32 4, %v4593_v50 }
 0x4ab   : > { %4115 = vtanh.f32 %v2997_v52  ;;  %v1496_v31 = vrot.slane %v5310_v29, %v1495_v30  ;;  %v1491_v55 = vsub.s32 5, %v4593_v50 }
 0x4ac   : > { %4117 = vtanh.f32 %v2999_v54 }
 0x4ad   : > { %4119 = vtanh.f32 %v3003_v56  ;;  %v1488_v56 = vrot.slane %v5310_v29, %v1487_v11 }
 0x4ae   : > { %4121 = vtanh.f32 %v3005_v57  ;;  %v1492_v57 = vrot.slane %v5310_v29, %v1491_v55 }
 0x4af   : > { %4123 = vtanh.f32 %v3004_v58 }
 0x4b0   : > { %4125 = vtanh.f32 %v3006_v59 }
 0x4b3   : > { %v4112_v60 = vpop.eup %4111 }
 0x4b4   : > { %v4114_v61 = vpop.eup %4113  ;;  %v3024_v62 = vmul.f32 0.5, %v4112_v60 }
 0x4b5   : > { %v4116_v63 = vpop.eup %4115  ;;  %v3026_v0 = vmul.f32 0.5, %v4114_v61 }
 0x4b6   : > { %v4118_v42 = vpop.eup %4117  ;;  %v3038_v1 = vadd.f32 0.5, %v3024_v62  ;;  %v3025_v2 = vmul.f32 0.5, %v4116_v63 }
 0x4b7   : > { %v4120_v40 = vpop.eup %4119  ;;  %v3040_v43 = vadd.f32 0.5, %v3026_v0  ;;  %v3027_v3 = vmul.f32 0.5, %v4118_v42 }
 0x4b8   : > { %v4122_v4 = vpop.eup %4121  ;;  %v3039_v5 = vadd.f32 0.5, %v3025_v2  ;;  %v3031_v6 = vmul.f32 0.5, %v4120_v40 }
 0x4b9   : > { %v4124_v7 = vpop.eup %4123  ;;  %v3041_v8 = vadd.f32 0.5, %v3027_v3  ;;  %v3033_v10 = vmul.f32 0.5, %v4122_v4 }
 0x4ba   : > { %v4126_v12 = vpop.eup %4125  ;;  %v3515_v13 = vpack.c.bf16 %v3039_v5, %v3038_v1  ;;  %v3045_v14 = vadd.f32 0.5, %v3031_v6  ;;  %v3032_v15 = vmul.f32 0.5, %v4124_v7 }
 0x4bb   : > { %v3516_v16 = vpack.c.bf16 %v3041_v8, %v3040_v43  ;;  %v3047_v17 = vadd.f32 0.5, %v3033_v10  ;;  %v3034_v18 = vmul.f32 0.5, %v4126_v12 }
 0x4bc   : > { %3096 = vst [vmem:[%s5325_s22] sm:$0xff] %v3515_v13  ;;  %v3046_v19 = vadd.f32 0.5, %v3032_v15 }
 0x4bd   : > { %3097 = vst [vmem:[%s5325_s22 + $0x8] sm:$0xff] %v3516_v16  ;;  %v3048_v20 = vadd.f32 0.5, %v3034_v18 }
 0x4be   : > { %v3519_v21 = vpack.c.bf16 %v3046_v19, %v3045_v14 }
 0x4bf   : > { %v3520_v22 = vpack.c.bf16 %v3048_v20, %v3047_v17 }
 0x4c0   : > { %3101 = vst [vmem:[%s5325_s22 + $0x1c] sm:$0xff] %v3519_v21 }
 0x4c1   : > { %3102 = vst [vmem:[%s5325_s22 + $0x24] sm:$0xff] %v3520_v22 }
 0x4c5   : > { %v3547_v23 = vpop.f32.mrb[20].mxu0 }
 0x4c6   : > { %v3548_v24 = vpop.f32.mrb[21].mxu0 }
 0x4c7   : > { %v3549_v25 = vadd.f32 %v3548_v24, %v3547_v23  ;;  %v3550_v26 = vpop.f32.mrb[22].mxu0 }
 0x4c8   : > { %v3551_v27 = vpop.f32.mrb[23].mxu0 }
 0x4c9   : > { %v3552_v28 = vadd.f32 %v3551_v27, %v3550_v26  ;;  %v2949_v41 = vadd.f32 %v3549_v25, %v1496_v31 }
 0x4cb   : > { %v2952_v37 = vadd.f32 %v3552_v28, %v1496_v31 }
 0x4e5   : > { %v3569_v32 = vpop.f32.mrb[24].mxu0 }
 0x4e6   : > { %v3570_v33 = vpop.f32.mrb[25].mxu0 }
 0x4e7   : > { %v3571_v34 = vadd.f32 %v3570_v33, %v3569_v32  ;;  %v3572_v35 = vpop.f32.mrb[26].mxu0 }
 0x4e8   : > { %v3573_v36 = vpop.f32.mrb[27].mxu0 }
 0x4e9   : > { %v2990_v38 = vadd.f32 %v3571_v34, %v2949_v41  ;;  %v3574_v39 = vadd.f32 %v3573_v36, %v3572_v35 }
 0x4eb   : > { %v3002_v44 = vmul.f32 0.5, %v2990_v38  ;;  %v2993_v51 = vadd.f32 %v3574_v39, %v2952_v37 }
 0x4ed   : > { %4127 = vtanh.f32 %v3002_v44  ;;  %v3009_v45 = vmul.f32 0.5, %v2993_v51 }
 0x4ef   : > { %4129 = vtanh.f32 %v3009_v45 }
 0x4f7   : > { %v4128_v46 = vpop.eup %4127 }
 0x4f8   : > { %v3030_v47 = vmul.f32 0.5, %v4128_v46 }
 0x4f9   : > { %v4130_v9 = vpop.eup %4129 }
 0x4fa   : > { %v3044_v48 = vadd.f32 0.5, %v3030_v47  ;;  %v3037_v49 = vmul.f32 0.5, %v4130_v9 }
 0x4fc   : > { %v3518_v53 = vpack.c.bf16 %v3044_v48, %v3044_v48  ;;  %v3051_v52 = vadd.f32 0.5, %v3037_v49 }
 0x4fe   : > { %3100 = vst.msk [vmem:[%s5325_s22 + $0x18] sm:$0xf] %vm3099_vm3, %v3518_v53  ;;  %v3522_v54 = vpack.c.bf16 %v3051_v52, %v3051_v52 }
 0x500   : > { %3104 = vst.msk [vmem:[%s5325_s22 + $0x34] sm:$0xf] %vm3099_vm3, %v3522_v54 }
 0x524   : > { %v2905_v58 = vpop.f32.mrb[8].mxu1 }
 0x525   : > { %v3603_v59 = vadd.f32 %v2905_v58, %v1488_v56  ;;  %v2907_v60 = vpop.f32.mrb[9].mxu1 }
 0x526   : > { %v3604_v61 = vadd.f32 %v2907_v60, %v1492_v57  ;;  %v2909_v62 = vpop.f32.mrb[10].mxu1 }
 0x527   : > { %v3000_v63 = vmul.f32 0.5, %v3603_v59  ;;  %v3605_v0 = vadd.f32 %v2909_v62, %v1488_v56  ;;  %v2911_v42 = vpop.f32.mrb[11].mxu1 }
 0x528   : > { %v3001_v1 = vmul.f32 0.5, %v3604_v61  ;;  %v3606_v2 = vadd.f32 %v2911_v42, %v1492_v57 }
 0x529   : > { %4131 = vtanh.f32 %v3000_v63  ;;  %v3007_v40 = vmul.f32 0.5, %v3605_v0 }
 0x52a   : > { %4133 = vtanh.f32 %v3001_v1  ;;  %v3008_v50 = vmul.f32 0.5, %v3606_v2 }
 0x52b   : > { %4135 = vtanh.f32 %v3007_v40 }
 0x52c   : > { %4137 = vtanh.f32 %v3008_v50 }
 0x533   : > { %v4132_v43 = vpop.eup %4131 }
 0x534   : > { %v4134_v29 = vpop.eup %4133  ;;  %v3028_v3 = vmul.f32 0.5, %v4132_v43 }
 0x535   : > { %v4136_v4 = vpop.eup %4135  ;;  %v3029_v5 = vmul.f32 0.5, %v4134_v29 }
 0x536   : > { %v4138_v6 = vpop.eup %4137  ;;  %v3042_v7 = vadd.f32 0.5, %v3028_v3  ;;  %v3035_v8 = vmul.f32 0.5, %v4136_v4 }
 0x537   : > { %v3043_v10 = vadd.f32 0.5, %v3029_v5  ;;  %v3036_v12 = vmul.f32 0.5, %v4138_v6 }
 0x538   : > { %v3049_v13 = vadd.f32 0.5, %v3035_v8 }
 0x539   : > { %v3517_v14 = vpack.c.bf16 %v3043_v10, %v3042_v7  ;;  %v3050_v15 = vadd.f32 0.5, %v3036_v12 }
 0x53b   : > { %3098 = vst [vmem:[%s5325_s22 + $0x10] sm:$0xff] %v3517_v14  ;;  %v3521_v16 = vpack.c.bf16 %v3050_v15, %v3049_v13 }
 0x53d   : > { %3103 = vst [vmem:[%s5325_s22 + $0x2c] sm:$0xff] %v3521_v16 }
 0x53e   : > { %4152 = shalt.err (!%p4149_p3)
}
 0x53f   : > { %s4153_s15 = scalar_lea.hbm %s5347_s12, 896  ;;  %s4157_s29 = scalar_lea.hbm %s5404_s11, 1792 }
 0x540   : > { %p4154_p4 = scmp.ne.s32.totalorder %s5347_s12, %s4153_s15  ;;  %p4158_p9 = scmp.lt.u32.totalorder %s5347_s12, %s5404_s11 }
 0x541   : > { %p4159_p10 = scmp.lt.u32.totalorder %s4157_s29, %s4153_s15  ;;  %p4161_p12 = scmp.lt.u32.totalorder %s4153_s15, %s5347_s12 }
 0x542   : > { %p4155_p7 = pnand %p4154_p4, %p4307_p5 }
 0x543   : > { %p4160_p11 = por %p4159_p10, %p4158_p9 }
 0x544   : > { %p4156_p8 = pneg %p4155_p7 }
 0x545   : > { %p4162_p13 = por %p4161_p12, %p4160_p11 }
 0x547   : > { %p4163_p0 = pnand %p4162_p13, %p4156_p8 }
 0x549   : > { %4166 = shalt.err (!%p4163_p0)
}
 0x54a   : > { %s4207_s0 = smov 448   ;;  %s4208_s21 = smov 28  }
 0x54b   : > { %3621 = dma.vmem_to_hbm [thread:$0]  (%p4307_p5), %s5341_s25, 896, %s5347_s12, %s5352_s13, %s4207_s0, %s4207_s0, %s4208_s21  }
 0x54c PF: > { %p3627_p1 = scmp.ge.s32.totalorder %s4201_s20, 2  ;;  %s3135_s16 = sand.u32 1, %s4189_s17  }
 0x54d   : > { %s3136_s15 = scalar_lea.sflag [#allocation3], %s3135_s16 }
 0x54e   : > { %p3624_p2 = pnand %p3627_p1, %p4311_p6 }
 0x550   : > { %4184 = dma.done.wait (!%p3624_p2), %s3136_s15, 896  }
 0x551   : > { %4186 = vsyncadd (!%p3624_p2), %s3136_s15, 4294966400  ;;  %p21_p3 = scmp.ge.s32.totalorder %s4294_s23, 4   ;;  %s5409_s17 = smov %s4193_s18 }
 0x552   : > { %s5410_s18 = smov %s4197_s19  ;;  %s5411_s19 = smov %s4305_s26 }
 0x553   : > { %s5412_s20 = smov %s4294_s23  ;;  %23 = sbr.rel (!%p21_p3) target bundleno = 5 (0x5), region = 99 }
 0x55a   :  { %3141 = vsyncpa [#allocation3], 1 }
 0x55b   :  { %3143 = vsyncpa [#allocation3 + $0x1], 1 }

</bundles_post_ra>
